<compile_context>
chip_gen: v7x
topology: tpu7x:2x2x1
jax: 0.10.0
libtpu: 0.0.40
codegen_flags: <defaults>
</compile_context>

<pallas_src>
import jax
import jax.numpy as jnp
from jax import lax
from jax.experimental import pallas as pl
from jax.experimental.pallas import tpu as pltpu


def _make_gin_fused_kernel(num_layers):
    """Builds a kernel fusing num_layers of (GINConv(max) -> LayerNorm -> ELU)."""

    def kernel(*refs):
        x_ref, bias_ref = refs[0], refs[1]
        param_refs = refs[2:2 + 4 * num_layers]
        out_ref = refs[-1]

        h = x_ref[...]                    # (BN, Din)  f32, stays on-chip
        nb = bias_ref[...]                # (BN, BN, 1) additive neighbor bias

        for l in range(num_layers):       # static unroll: all layers fused
            w_ref, b_ref, g_ref, be_ref = param_refs[4 * l:4 * l + 4]

            # Max aggregation over in-neighbors (vectorized, no per-j loop):
            #   m[i, d] = max_j ( bias[i, j] + h[j, d] )
            # bias is -1e30 for non-edges; self-loops guarantee a finite max.
            m = jnp.max(nb + h[None, :, :], axis=1)                # (BN, D)

            # GIN update with eps = 0:  z_i = h_i + max_j h_j, then Linear (MXU).
            z = h + m
            y = jnp.dot(z, w_ref[...],
                        preferred_element_type=jnp.float32) + b_ref[...]

            # LayerNorm over the feature dim (eps = 1e-5, affine).
            mu = jnp.mean(y, axis=-1, keepdims=True)
            var = jnp.mean((y - mu) ** 2, axis=-1, keepdims=True)
            yn = (y - mu) * lax.rsqrt(var + 1e-5) * g_ref[...] + be_ref[...]

            # ELU (alpha = 1).  Clamp the exp argument so the unselected branch
            # never produces inf; exp goes to the EUP slot (essentially free).
            h = jnp.where(yn > 0, yn, jnp.exp(jnp.minimum(yn, 0.0)) - 1.0)

        out_ref[...] = h

    return kernel


def simple_gin_forward(x, neigh_bias, params):
    """x: (BN, Din) f32, neigh_bias: (BN, BN, 1) f32 -> (BN, Dout) f32."""
    num_layers = len(params)
    out_dim = params[-1][0].shape[1]
    flat_params = [p for layer in params for p in layer]
    n_inputs = 2 + len(flat_params)

    return pl.pallas_call(
        _make_gin_fused_kernel(num_layers),
        out_shape=jax.ShapeDtypeStruct((x.shape[0], out_dim), jnp.float32),
        # Single grid step: whole batch resident in VMEM (a few KB total).
        in_specs=[pl.BlockSpec(memory_space=pltpu.MemorySpace.VMEM)
                  for _ in range(n_inputs)],
        out_specs=pl.BlockSpec(memory_space=pltpu.MemorySpace.VMEM),
    )(x, neigh_bias, *flat_params)


def init_params(key, in_dim, hidden_dim, out_dim, num_layers):
    """Parameters matching SimpleGIN.__init__: per layer (W, b, ln_gamma, ln_beta)."""
    dims = [(in_dim, hidden_dim)]
    for _ in range(1, num_layers - 1):
        dims.append((hidden_dim, hidden_dim))
    dims.append((hidden_dim, out_dim))

    params = []
    keys = jax.random.split(key, len(dims))
    for (din, dout), k in zip(dims, keys):
        kw, kb = jax.random.split(k, 2)
        bound = 1.0 / jnp.sqrt(din)                      # nn.Linear default init
        w = jax.random.uniform(kw, (din, dout), jnp.float32, -bound, bound)
        b = jax.random.uniform(kb, (1, dout), jnp.float32, -bound, bound)
        gamma = jnp.ones((1, dout), jnp.float32)         # nn.LayerNorm defaults
        beta = jnp.zeros((1, dout), jnp.float32)
        params.append((w, b, gamma, beta))
    return params


def build_block_adj(adj):
    """(B, N, N) per-graph adjacency -> (B*N, B*N) block-diagonal batched adjacency."""
    B, N, _ = adj.shape
    blocks = jnp.zeros((B * N, B * N), jnp.float32)
    for b in range(B):
        blocks = blocks.at[b * N:(b + 1) * N, b * N:(b + 1) * N].set(adj[b])
    return blocks


def _reference_forward(x, block_adj, params):
    """Pure-JAX reference (same GIN math) for a correctness sanity check."""
    h = x
    for (w, b, g, be) in params:
        masked = jnp.where(block_adj[:, :, None] > 0, h[None, :, :], -jnp.inf)
        m = jnp.max(masked, axis=1)
        z = h + m
        y = jnp.dot(z, w, preferred_element_type=jnp.float32,
                    precision=lax.Precision.HIGHEST) + b
        mu = jnp.mean(y, axis=-1, keepdims=True)
        var = jnp.mean((y - mu) ** 2, axis=-1, keepdims=True)
        yn = (y - mu) * lax.rsqrt(var + 1e-5) * g + be
        h = jnp.where(yn > 0, yn, jnp.expm1(yn))
    return h


if __name__ == "__main__":
    B, N = 2, 8                                   # 2 graphs, 8 nodes each
    in_dim, hidden_dim, out_dim, num_layers = 4, 32, 32, 3

    key = jax.random.PRNGKey(0)
    k_feat, k_adj, k_param = jax.random.split(key, 3)

    feats = jax.random.normal(k_feat, (B, N, in_dim), jnp.float32)

    # Random sparse graph, symmetrized, with self loops (dgl.add_self_loop).
    adj = (jax.random.uniform(k_adj, (B, N, N)) < 0.3).astype(jnp.float32)
    adj = jnp.maximum(adj, jnp.transpose(adj, (0, 2, 1)))
    adj = jnp.maximum(adj, jnp.eye(N, dtype=jnp.float32)[None])

    params = init_params(k_param, in_dim, hidden_dim, out_dim, num_layers)

    # Host-side preprocessing (dgl.batch equivalent): flat node features and a
    # block-diagonal additive neighbor bias (0 = edge, -1e30 = no edge).
    x = feats.reshape(B * N, in_dim)
    block_adj = build_block_adj(adj)                                  # (BN, BN)
    neigh_bias = jnp.where(block_adj > 0, 0.0, -1e30).astype(jnp.float32)[:, :, None]

    out = simple_gin_forward(x, neigh_bias, params)
    out = jax.block_until_ready(out)

    ref = _reference_forward(x, block_adj, params)
    assert out.shape == (B * N, out_dim)
    assert jnp.allclose(out, ref, rtol=1e-2, atol=1e-2), "mismatch vs JAX reference"

    # Updated batched node features (ndata['feat'] of the returned batched graph).
    updated_feats = out.reshape(B, N, out_dim)
    assert updated_feats.shape == (B, N, out_dim)

    print("KERNEL_OK")
</pallas_src>

<mosaic_0001>
module attributes {stable_mosaic.version = 11 : i64} {
  func.func @kernel(%arg0: memref<16x4xf32, #tpu.memory_space<vmem>>, %arg1: memref<16x16x1xf32, #tpu.memory_space<vmem>>, %arg2: memref<4x32xf32, #tpu.memory_space<vmem>>, %arg3: memref<1x32xf32, #tpu.memory_space<vmem>>, %arg4: memref<1x32xf32, #tpu.memory_space<vmem>>, %arg5: memref<1x32xf32, #tpu.memory_space<vmem>>, %arg6: memref<32x32xf32, #tpu.memory_space<vmem>>, %arg7: memref<1x32xf32, #tpu.memory_space<vmem>>, %arg8: memref<1x32xf32, #tpu.memory_space<vmem>>, %arg9: memref<1x32xf32, #tpu.memory_space<vmem>>, %arg10: memref<32x32xf32, #tpu.memory_space<vmem>>, %arg11: memref<1x32xf32, #tpu.memory_space<vmem>>, %arg12: memref<1x32xf32, #tpu.memory_space<vmem>>, %arg13: memref<1x32xf32, #tpu.memory_space<vmem>>, %arg14: memref<16x32xf32, #tpu.memory_space<vmem>>) attributes {dimension_semantics = [], scalar_prefetch = 0 : i64, scratch_operands = 0 : i64, tpu.core_type = #tpu.core_type<tc>} {
    %c0 = arith.constant 0 : index
    %c0_0 = arith.constant 0 : index
    %0 = vector.load %arg0[%c0, %c0_0] : memref<16x4xf32, #tpu.memory_space<vmem>>, vector<16x4xf32>
    %c0_1 = arith.constant 0 : index
    %c0_2 = arith.constant 0 : index
    %c0_3 = arith.constant 0 : index
    %1 = vector.load %arg1[%c0_1, %c0_2, %c0_3] : memref<16x16x1xf32, #tpu.memory_space<vmem>>, vector<16x16x1xf32>
    %2 = vector.shape_cast %0 : vector<16x4xf32> to vector<1x16x4xf32>
    %3 = vector.broadcast %1 : vector<16x16x1xf32> to vector<16x16x4xf32>
    %4 = vector.broadcast %2 : vector<1x16x4xf32> to vector<16x16x4xf32>
    %5 = arith.addf %3, %4 : vector<16x16x4xf32>
    %cst = arith.constant dense<0xFF800000> : vector<16x4xf32>
    %6 = vector.multi_reduction <maximumf>, %5, %cst [1] : vector<16x16x4xf32> to vector<16x4xf32>
    %7 = arith.addf %0, %6 : vector<16x4xf32>
    %c0_4 = arith.constant 0 : index
    %c0_5 = arith.constant 0 : index
    %8 = vector.load %arg2[%c0_4, %c0_5] : memref<4x32xf32, #tpu.memory_space<vmem>>, vector<4x32xf32>
    %cst_6 = arith.constant dense<0.000000e+00> : vector<16x32xf32>
    %9 = tpu.matmul %7, %8, %cst_6 {dimension_numbers = #tpu.dot_dimension_numbers<[1], [0], [0], [1], [0, 0, 1, 1], [], []>} : vector<16x4xf32>, vector<4x32xf32>, vector<16x32xf32> -> vector<16x32xf32>
    %c0_7 = arith.constant 0 : index
    %c0_8 = arith.constant 0 : index
    %10 = vector.load %arg3[%c0_7, %c0_8] : memref<1x32xf32, #tpu.memory_space<vmem>>, vector<1x32xf32>
    %11 = vector.broadcast %10 : vector<1x32xf32> to vector<16x32xf32>
    %12 = arith.addf %9, %11 : vector<16x32xf32>
    %cst_9 = arith.constant dense<0.000000e+00> : vector<16xf32>
    %13 = vector.multi_reduction <add>, %12, %cst_9 [1] : vector<16x32xf32> to vector<16xf32>
    %14 = vector.shape_cast %13 : vector<16xf32> to vector<16x1xf32>
    %cst_10 = arith.constant 3.200000e+01 : f32
    %15 = vector.broadcast %cst_10 : f32 to vector<16x1xf32>
    %16 = arith.divf %14, %15 : vector<16x1xf32>
    %17 = vector.broadcast %16 : vector<16x1xf32> to vector<16x32xf32>
    %18 = arith.subf %12, %17 : vector<16x32xf32>
    %19 = arith.mulf %18, %18 : vector<16x32xf32>
    %cst_11 = arith.constant dense<0.000000e+00> : vector<16xf32>
    %20 = vector.multi_reduction <add>, %19, %cst_11 [1] : vector<16x32xf32> to vector<16xf32>
    %21 = vector.shape_cast %20 : vector<16xf32> to vector<16x1xf32>
    %cst_12 = arith.constant 3.200000e+01 : f32
    %22 = vector.broadcast %cst_12 : f32 to vector<16x1xf32>
    %23 = arith.divf %21, %22 : vector<16x1xf32>
    %24 = vector.broadcast %16 : vector<16x1xf32> to vector<16x32xf32>
    %25 = arith.subf %12, %24 : vector<16x32xf32>
    %cst_13 = arith.constant 9.99999974E-6 : f32
    %26 = vector.broadcast %cst_13 : f32 to vector<16x1xf32>
    %27 = arith.addf %23, %26 : vector<16x1xf32>
    %28 = math.rsqrt %27 : vector<16x1xf32>
    %29 = vector.broadcast %28 : vector<16x1xf32> to vector<16x32xf32>
    %30 = arith.mulf %25, %29 : vector<16x32xf32>
    %c0_14 = arith.constant 0 : index
    %c0_15 = arith.constant 0 : index
    %31 = vector.load %arg4[%c0_14, %c0_15] : memref<1x32xf32, #tpu.memory_space<vmem>>, vector<1x32xf32>
    %32 = vector.broadcast %31 : vector<1x32xf32> to vector<16x32xf32>
    %33 = arith.mulf %30, %32 : vector<16x32xf32>
    %c0_16 = arith.constant 0 : index
    %c0_17 = arith.constant 0 : index
    %34 = vector.load %arg5[%c0_16, %c0_17] : memref<1x32xf32, #tpu.memory_space<vmem>>, vector<1x32xf32>
    %35 = vector.broadcast %34 : vector<1x32xf32> to vector<16x32xf32>
    %36 = arith.addf %33, %35 : vector<16x32xf32>
    %cst_18 = arith.constant 0.000000e+00 : f32
    %37 = vector.broadcast %cst_18 : f32 to vector<16x32xf32>
    %38 = arith.cmpf ogt, %36, %37 : vector<16x32xf32>
    %cst_19 = arith.constant 0.000000e+00 : f32
    %39 = vector.broadcast %cst_19 : f32 to vector<16x32xf32>
    %40 = arith.minimumf %36, %39 : vector<16x32xf32>
    %41 = math.exp %40 : vector<16x32xf32>
    %cst_20 = arith.constant 1.000000e+00 : f32
    %42 = vector.broadcast %cst_20 : f32 to vector<16x32xf32>
    %43 = arith.subf %41, %42 : vector<16x32xf32>
    %44 = arith.select %38, %36, %43 : vector<16x32xi1>, vector<16x32xf32>
    %45 = vector.shape_cast %44 : vector<16x32xf32> to vector<1x16x32xf32>
    %46 = vector.broadcast %1 : vector<16x16x1xf32> to vector<16x16x32xf32>
    %47 = vector.broadcast %45 : vector<1x16x32xf32> to vector<16x16x32xf32>
    %48 = arith.addf %46, %47 : vector<16x16x32xf32>
    %cst_21 = arith.constant dense<0xFF800000> : vector<16x32xf32>
    %49 = vector.multi_reduction <maximumf>, %48, %cst_21 [1] : vector<16x16x32xf32> to vector<16x32xf32>
    %50 = arith.addf %44, %49 : vector<16x32xf32>
    %c0_22 = arith.constant 0 : index
    %c0_23 = arith.constant 0 : index
    %51 = vector.load %arg6[%c0_22, %c0_23] : memref<32x32xf32, #tpu.memory_space<vmem>>, vector<32x32xf32>
    %cst_24 = arith.constant dense<0.000000e+00> : vector<16x32xf32>
    %52 = tpu.matmul %50, %51, %cst_24 {dimension_numbers = #tpu.dot_dimension_numbers<[1], [0], [0], [1], [0, 0, 1, 1], [], []>} : vector<16x32xf32>, vector<32x32xf32>, vector<16x32xf32> -> vector<16x32xf32>
    %c0_25 = arith.constant 0 : index
    %c0_26 = arith.constant 0 : index
    %53 = vector.load %arg7[%c0_25, %c0_26] : memref<1x32xf32, #tpu.memory_space<vmem>>, vector<1x32xf32>
    %54 = vector.broadcast %53 : vector<1x32xf32> to vector<16x32xf32>
    %55 = arith.addf %52, %54 : vector<16x32xf32>
    %cst_27 = arith.constant dense<0.000000e+00> : vector<16xf32>
    %56 = vector.multi_reduction <add>, %55, %cst_27 [1] : vector<16x32xf32> to vector<16xf32>
    %57 = vector.shape_cast %56 : vector<16xf32> to vector<16x1xf32>
    %cst_28 = arith.constant 3.200000e+01 : f32
    %58 = vector.broadcast %cst_28 : f32 to vector<16x1xf32>
    %59 = arith.divf %57, %58 : vector<16x1xf32>
    %60 = vector.broadcast %59 : vector<16x1xf32> to vector<16x32xf32>
    %61 = arith.subf %55, %60 : vector<16x32xf32>
    %62 = arith.mulf %61, %61 : vector<16x32xf32>
    %cst_29 = arith.constant dense<0.000000e+00> : vector<16xf32>
    %63 = vector.multi_reduction <add>, %62, %cst_29 [1] : vector<16x32xf32> to vector<16xf32>
    %64 = vector.shape_cast %63 : vector<16xf32> to vector<16x1xf32>
    %cst_30 = arith.constant 3.200000e+01 : f32
    %65 = vector.broadcast %cst_30 : f32 to vector<16x1xf32>
    %66 = arith.divf %64, %65 : vector<16x1xf32>
    %67 = vector.broadcast %59 : vector<16x1xf32> to vector<16x32xf32>
    %68 = arith.subf %55, %67 : vector<16x32xf32>
    %cst_31 = arith.constant 9.99999974E-6 : f32
    %69 = vector.broadcast %cst_31 : f32 to vector<16x1xf32>
    %70 = arith.addf %66, %69 : vector<16x1xf32>
    %71 = math.rsqrt %70 : vector<16x1xf32>
    %72 = vector.broadcast %71 : vector<16x1xf32> to vector<16x32xf32>
    %73 = arith.mulf %68, %72 : vector<16x32xf32>
    %c0_32 = arith.constant 0 : index
    %c0_33 = arith.constant 0 : index
    %74 = vector.load %arg8[%c0_32, %c0_33] : memref<1x32xf32, #tpu.memory_space<vmem>>, vector<1x32xf32>
    %75 = vector.broadcast %74 : vector<1x32xf32> to vector<16x32xf32>
    %76 = arith.mulf %73, %75 : vector<16x32xf32>
    %c0_34 = arith.constant 0 : index
    %c0_35 = arith.constant 0 : index
    %77 = vector.load %arg9[%c0_34, %c0_35] : memref<1x32xf32, #tpu.memory_space<vmem>>, vector<1x32xf32>
    %78 = vector.broadcast %77 : vector<1x32xf32> to vector<16x32xf32>
    %79 = arith.addf %76, %78 : vector<16x32xf32>
    %cst_36 = arith.constant 0.000000e+00 : f32
    %80 = vector.broadcast %cst_36 : f32 to vector<16x32xf32>
    %81 = arith.cmpf ogt, %79, %80 : vector<16x32xf32>
    %cst_37 = arith.constant 0.000000e+00 : f32
    %82 = vector.broadcast %cst_37 : f32 to vector<16x32xf32>
    %83 = arith.minimumf %79, %82 : vector<16x32xf32>
    %84 = math.exp %83 : vector<16x32xf32>
    %cst_38 = arith.constant 1.000000e+00 : f32
    %85 = vector.broadcast %cst_38 : f32 to vector<16x32xf32>
    %86 = arith.subf %84, %85 : vector<16x32xf32>
    %87 = arith.select %81, %79, %86 : vector<16x32xi1>, vector<16x32xf32>
    %88 = vector.shape_cast %87 : vector<16x32xf32> to vector<1x16x32xf32>
    %89 = vector.broadcast %1 : vector<16x16x1xf32> to vector<16x16x32xf32>
    %90 = vector.broadcast %88 : vector<1x16x32xf32> to vector<16x16x32xf32>
    %91 = arith.addf %89, %90 : vector<16x16x32xf32>
    %cst_39 = arith.constant dense<0xFF800000> : vector<16x32xf32>
    %92 = vector.multi_reduction <maximumf>, %91, %cst_39 [1] : vector<16x16x32xf32> to vector<16x32xf32>
    %93 = arith.addf %87, %92 : vector<16x32xf32>
    %c0_40 = arith.constant 0 : index
    %c0_41 = arith.constant 0 : index
    %94 = vector.load %arg10[%c0_40, %c0_41] : memref<32x32xf32, #tpu.memory_space<vmem>>, vector<32x32xf32>
    %cst_42 = arith.constant dense<0.000000e+00> : vector<16x32xf32>
    %95 = tpu.matmul %93, %94, %cst_42 {dimension_numbers = #tpu.dot_dimension_numbers<[1], [0], [0], [1], [0, 0, 1, 1], [], []>} : vector<16x32xf32>, vector<32x32xf32>, vector<16x32xf32> -> vector<16x32xf32>
    %c0_43 = arith.constant 0 : index
    %c0_44 = arith.constant 0 : index
    %96 = vector.load %arg11[%c0_43, %c0_44] : memref<1x32xf32, #tpu.memory_space<vmem>>, vector<1x32xf32>
    %97 = vector.broadcast %96 : vector<1x32xf32> to vector<16x32xf32>
    %98 = arith.addf %95, %97 : vector<16x32xf32>
    %cst_45 = arith.constant dense<0.000000e+00> : vector<16xf32>
    %99 = vector.multi_reduction <add>, %98, %cst_45 [1] : vector<16x32xf32> to vector<16xf32>
    %100 = vector.shape_cast %99 : vector<16xf32> to vector<16x1xf32>
    %cst_46 = arith.constant 3.200000e+01 : f32
    %101 = vector.broadcast %cst_46 : f32 to vector<16x1xf32>
    %102 = arith.divf %100, %101 : vector<16x1xf32>
    %103 = vector.broadcast %102 : vector<16x1xf32> to vector<16x32xf32>
    %104 = arith.subf %98, %103 : vector<16x32xf32>
    %105 = arith.mulf %104, %104 : vector<16x32xf32>
    %cst_47 = arith.constant dense<0.000000e+00> : vector<16xf32>
    %106 = vector.multi_reduction <add>, %105, %cst_47 [1] : vector<16x32xf32> to vector<16xf32>
    %107 = vector.shape_cast %106 : vector<16xf32> to vector<16x1xf32>
    %cst_48 = arith.constant 3.200000e+01 : f32
    %108 = vector.broadcast %cst_48 : f32 to vector<16x1xf32>
    %109 = arith.divf %107, %108 : vector<16x1xf32>
    %110 = vector.broadcast %102 : vector<16x1xf32> to vector<16x32xf32>
    %111 = arith.subf %98, %110 : vector<16x32xf32>
    %cst_49 = arith.constant 9.99999974E-6 : f32
    %112 = vector.broadcast %cst_49 : f32 to vector<16x1xf32>
    %113 = arith.addf %109, %112 : vector<16x1xf32>
    %114 = math.rsqrt %113 : vector<16x1xf32>
    %115 = vector.broadcast %114 : vector<16x1xf32> to vector<16x32xf32>
    %116 = arith.mulf %111, %115 : vector<16x32xf32>
    %c0_50 = arith.constant 0 : index
    %c0_51 = arith.constant 0 : index
    %117 = vector.load %arg12[%c0_50, %c0_51] : memref<1x32xf32, #tpu.memory_space<vmem>>, vector<1x32xf32>
    %118 = vector.broadcast %117 : vector<1x32xf32> to vector<16x32xf32>
    %119 = arith.mulf %116, %118 : vector<16x32xf32>
    %c0_52 = arith.constant 0 : index
    %c0_53 = arith.constant 0 : index
    %120 = vector.load %arg13[%c0_52, %c0_53] : memref<1x32xf32, #tpu.memory_space<vmem>>, vector<1x32xf32>
    %121 = vector.broadcast %120 : vector<1x32xf32> to vector<16x32xf32>
    %122 = arith.addf %119, %121 : vector<16x32xf32>
    %cst_54 = arith.constant 0.000000e+00 : f32
    %123 = vector.broadcast %cst_54 : f32 to vector<16x32xf32>
    %124 = arith.cmpf ogt, %122, %123 : vector<16x32xf32>
    %cst_55 = arith.constant 0.000000e+00 : f32
    %125 = vector.broadcast %cst_55 : f32 to vector<16x32xf32>
    %126 = arith.minimumf %122, %125 : vector<16x32xf32>
    %127 = math.exp %126 : vector<16x32xf32>
    %cst_56 = arith.constant 1.000000e+00 : f32
    %128 = vector.broadcast %cst_56 : f32 to vector<16x32xf32>
    %129 = arith.subf %127, %128 : vector<16x32xf32>
    %130 = arith.select %124, %122, %129 : vector<16x32xi1>, vector<16x32xf32>
    %c0_57 = arith.constant 0 : index
    %c0_58 = arith.constant 0 : index
    %131 = vector.load %arg14[%c0_57, %c0_58] : memref<16x32xf32, #tpu.memory_space<vmem>>, vector<16x32xf32>
    tpu.vector_store %arg14[%c0_57, %c0_58], %130 {strides = array<i32>} : memref<16x32xf32, #tpu.memory_space<vmem>>, vector<16x32xf32>,
    return
  }
}

</mosaic_0001>

<bundles_post_ra>
// kernel: tpu_custom_call.1
= control target key start
LH: loop header
LB: loop body
LE: loop exit
PB: predicated region body
PF: predicated region fallthrough
CT: control target
= control target key end

     0   :  { %v1479_v2 = vmov 0   ;;  %s2164_s0 = inlined_call_operand.vmem [shape: f32[16,4], index: 0, kind: input, shape index: {}]   ;;  %s2165_s1 = inlined_call_operand.vmem [shape: f32[16,16,1], index: 1, kind: input, shape index: {}]   ;;  %s2166_s2 = inlined_call_operand.vmem [shape: f32[4,32], index: 2, kind: input, shape index: {}]   ;;  %s2167_s3 = inlined_call_operand.vmem [shape: f32[1,32], index: 3, kind: input, shape index: {}]   ;;  %s2168_s4 = inlined_call_operand.vmem [shape: f32[1,32], index: 4, kind: input, shape index: {}]   ;;  %s2169_s5 = inlined_call_operand.vmem [shape: f32[1,32], index: 5, kind: input, shape index: {}]   ;;  %s2170_s6 = inlined_call_operand.vmem [shape: f32[32,32], index: 6, kind: input, shape index: {}]   ;;  %s2171_s7 = inlined_call_operand.vmem [shape: f32[1,32], index: 7, kind: input, shape index: {}]   ;;  %s2172_s8 = inlined_call_operand.vmem [shape: f32[1,32], index: 8, kind: input, shape index: {}]   ;;  %s2173_s9 = inlined_call_operand.vmem [shape: f32[1,32], index: 9, kind: input, shape index: {}]   ;;  %s2174_s10 = inlined_call_operand.vmem [shape: f32[32,32], index: 10, kind: input, shape index: {}]   ;;  %s2175_s11 = inlined_call_operand.vmem [shape: f32[1,32], index: 11, kind: input, shape index: {}]   ;;  %s2176_s12 = inlined_call_operand.vmem [shape: f32[1,32], index: 12, kind: input, shape index: {}]   ;;  %s2177_s13 = inlined_call_operand.vmem [shape: f32[1,32], index: 13, kind: input, shape index: {}]   ;;  %s2178_s14 = inlined_call_operand.hbm [shape: f32[16,32], index: 14, kind: output, shape index: {}]  }
   0x1   :  { %v52_v0 = vld [vmem:[%s2165_s1 + $0x10] sm:$0xff]  ;;  %v50_v1 = vld [vmem:[%s2165_s1] sm:$0xff]  ;;  %1430 = vset.pattern.permute.xlu1 %v1479_v2  ;;  %1429 = vset.pattern.permute.xlu0 %v1479_v2  ;;  %v53_v3 = vld [vmem:[%s2165_s1 + $0x18] sm:$0xff] }
   0x2   :  { %94 = vperm.xlu1 %1430, %v52_v0   ;;  %84 = vperm.xlu0 %1429, %v50_v1   ;;  %v51_v4 = vld [vmem:[%s2165_s1 + $0x8] sm:$0xff]  ;;  %v54_v6 = vld [vmem:[%s2165_s1 + $0x20] sm:$0xff] }
   0x3   :  { %v55_v5 = vld [vmem:[%s2165_s1 + $0x28] sm:$0xff]  ;;  %v66_v8 = vld [vmem:[%s2165_s1 + $0x80] sm:$0xff] }
   0x4   :  { %v67_v7 = vld [vmem:[%s2165_s1 + $0x88] sm:$0xff] }
   0x6   :  { %99 = vperm.xlu1 %1430, %v53_v3   ;;  %89 = vperm.xlu0 %1429, %v51_v4  }
   0xa   :  { %109 = vperm.xlu1 %1430, %v55_v5   ;;  %104 = vperm.xlu0 %1429, %v54_v6  }
   0xb   :  { %19 = vsyncpa [#allocation3], 0  ;;  %v69_v9 = vld [vmem:[%s2165_s1 + $0x98] sm:$0xff]  ;;  %v68_v10 = vld [vmem:[%s2165_s1 + $0x90] sm:$0xff]  ;;  %vm474_vm0 = vcmask 1043456   ;;  %vm274_vm1 = vcmask 31744  }
   0xc   :  { %v57_v11 = vld [vmem:[%s2165_s1 + $0x38] sm:$0xff]  ;;  %v56_v12 = vld [vmem:[%s2165_s1 + $0x30] sm:$0xff]  ;;  %v71_v13 = vld [vmem:[%s2165_s1 + $0xa8] sm:$0xff]  ;;  %vm435_vm2 = vcmask 1041409   ;;  %vm437_vm3 = vcmask 1042434   ;;  %vm439_vm4 = vcmask 1043459  }
   0xd   :  { %v70_v14 = vld [vmem:[%s2165_s1 + $0xa0] sm:$0xff]  ;;  %v59_v15 = vld [vmem:[%s2165_s1 + $0x48] sm:$0xff]  ;;  %v73_v17 = vld [vmem:[%s2165_s1 + $0xb8] sm:$0xff]  ;;  %vm441_vm5 = vcmask 1044484   ;;  %vm443_vm6 = vcmask 1045509   ;;  %vm445_vm7 = vcmask 1046534  }
   0xe   :  { %169 = vperm.xlu1 %1430, %v67_v7   ;;  %164 = vperm.xlu0 %1429, %v66_v8   ;;  %v58_v16 = vld [vmem:[%s2165_s1 + $0x40] sm:$0xff]  ;;  %v72_v18 = vld [vmem:[%s2165_s1 + $0xb0] sm:$0xff]  ;;  %v61_v19 = vld [vmem:[%s2165_s1 + $0x58] sm:$0xff]  ;;  %vm447_vm8 = vcmask 1047559   ;;  %vm553_vm9 = vcmask 261120   ;;  %s1480_s21 = smov [#allocation2]  }
   0xf   :  { %v60_v20 = vld [vmem:[%s2165_s1 + $0x50] sm:$0xff]  ;;  %v75_v21 = vld [vmem:[%s2165_s1 + $0xc8] sm:$0xff]  ;;  %v74_v22 = vld [vmem:[%s2165_s1 + $0xc0] sm:$0xff] }
  0x10   :  { %v63_v23 = vld [vmem:[%s2165_s1 + $0x68] sm:$0xff]  ;;  %v62_v24 = vld [vmem:[%s2165_s1 + $0x60] sm:$0xff]  ;;  %v77_v25 = vld [vmem:[%s2165_s1 + $0xd8] sm:$0xff] }
  0x11   :  { %v76_v26 = vld [vmem:[%s2165_s1 + $0xd0] sm:$0xff]  ;;  %v65_v27 = vld [vmem:[%s2165_s1 + $0x78] sm:$0xff]  ;;  %v79_v29 = vld [vmem:[%s2165_s1 + $0xe8] sm:$0xff] }
  0x12   :  { %179 = vperm.xlu1 %1430, %v69_v9   ;;  %174 = vperm.xlu0 %1429, %v68_v10   ;;  %v64_v28 = vld [vmem:[%s2165_s1 + $0x70] sm:$0xff]  ;;  %v78_v30 = vld [vmem:[%s2165_s1 + $0xe0] sm:$0xff]  ;;  %v81_v31 = vld [vmem:[%s2165_s1 + $0xf8] sm:$0xff] }
  0x13   :  { %v80_v32 = vld [vmem:[%s2165_s1 + $0xf0] sm:$0xff]  ;;  %v460_v33 = vld [vmem:[%s2166_s2] sm:$0xf]  ;;  %v1668_v38 = vld [vmem:[%s2164_s0 + $0x8] sm:$0xff] }
  0x14   :  { %1382 = vmatprep.subr.msk.mxu0 %vm474_vm0, %v460_v33  ;;  %v1677_v41 = vld [vmem:[%s2164_s0] sm:$0xff] }
  0x15   :  { %1383 = vmatpush3.msk.msra.mxu0 %vm474_vm0, %v460_v33 }
  0x16   :  { %119 = vperm.xlu1 %1430, %v57_v11   ;;  %114 = vperm.xlu0 %1429, %v56_v12  }
  0x1a   :  { %189 = vperm.xlu1 %1430, %v71_v13   ;;  %184 = vperm.xlu0 %1429, %v70_v14  }
  0x1e   :  { %129 = vperm.xlu1 %1430, %v59_v15   ;;  %124 = vperm.xlu0 %1429, %v58_v16  }
  0x22   :  { %199 = vperm.xlu1 %1430, %v73_v17   ;;  %194 = vperm.xlu0 %1429, %v72_v18  }
  0x26   :  { %139 = vperm.xlu1 %1430, %v61_v19   ;;  %134 = vperm.xlu0 %1429, %v60_v20  }
  0x2a   :  { %209 = vperm.xlu1 %1430, %v75_v21   ;;  %204 = vperm.xlu0 %1429, %v74_v22  }
  0x2e   :  { %149 = vperm.xlu1 %1430, %v63_v23   ;;  %144 = vperm.xlu0 %1429, %v62_v24  }
  0x32   :  { %219 = vperm.xlu1 %1430, %v77_v25   ;;  %214 = vperm.xlu0 %1429, %v76_v26  }
  0x36   :  { %159 = vperm.xlu1 %1430, %v65_v27   ;;  %154 = vperm.xlu0 %1429, %v64_v28  }
  0x3a   :  { %229 = vperm.xlu1 %1430, %v79_v29   ;;  %224 = vperm.xlu0 %1429, %v78_v30  }
  0x3e   :  { %239 = vperm.xlu1 %1430, %v81_v31   ;;  %234 = vperm.xlu0 %1429, %v80_v32  }
  0x81   :  { %v1657_v34 = vpop.permute.xlu1 %94  ;;  %v1659_v35 = vpop.permute.xlu0 %84 }
  0x82   :  { %v244_v46 = vadd.f32 %v1657_v34, %v1677_v41  ;;  %v242_v47 = vadd.f32 %v1659_v35, %v1677_v41 }
  0x84   :  { %v284_v52 = vsel %vm274_vm1, %v244_v46, -inf  ;;  %v275_v53 = vsel %vm274_vm1, %v242_v47, -inf }
  0x85   :  { %v1661_v36 = vpop.permute.xlu1 %99  ;;  %v1663_v37 = vpop.permute.xlu0 %89 }
  0x86   :  { %v245_v42 = vadd.f32 %v1661_v36, %v1668_v38  ;;  %v243_v43 = vadd.f32 %v1663_v37, %v1668_v38 }
  0x88   :  { %v285_v48 = vsel %vm274_vm1, %v245_v42, -inf  ;;  %v276_v49 = vsel %vm274_vm1, %v243_v43, -inf }
  0x89   :  { %v1670_v39 = vpop.permute.xlu1 %109  ;;  %v1672_v40 = vpop.permute.xlu0 %104  ;;  %v286_v56 = vmax.f32 %v284_v52, %v285_v48  ;;  %v277_v57 = vmax.f32 %v275_v53, %v276_v49 }
  0x8a   :  { %v247_v54 = vadd.f32 %v1670_v39, %v1668_v38  ;;  %v246_v55 = vadd.f32 %v1672_v40, %v1677_v41 }
  0x8b   :  { %v287_v62 = vrot.slane %v286_v56, 4  ;;  %v278_v63 = vrot.slane %v277_v57, 4 }
  0x8c   :  { %v294_v60 = vsel %vm274_vm1, %v247_v54, -inf  ;;  %v293_v61 = vsel %vm274_vm1, %v246_v55, -inf }
  0x8d   :  { %v1683_v44 = vpop.permute.xlu1 %169  ;;  %v1685_v45 = vpop.permute.xlu0 %164  ;;  %v295_v0 = vmax.f32 %v293_v61, %v294_v60  ;;  %v288_v5 = vmax.f32 %v286_v56, %v287_v62  ;;  %v279_v6 = vmax.f32 %v277_v57, %v278_v63 }
  0x8e   :  { %v259_v3 = vadd.f32 %v1683_v44, %v1668_v38  ;;  %v258_v4 = vadd.f32 %v1685_v45, %v1677_v41 }
  0x8f   :  { %v296_v9 = vrot.slane %v295_v0, 4  ;;  %v289_v14 = vrot.slane %v288_v5, 2  ;;  %v280_v15 = vrot.slane %v279_v6, 2 }
  0x90   :  { %v348_v12 = vsel %vm274_vm1, %v259_v3, -inf  ;;  %v347_v13 = vsel %vm274_vm1, %v258_v4, -inf }
  0x91   :  { %v1693_v50 = vpop.permute.xlu1 %179  ;;  %v1695_v51 = vpop.permute.xlu0 %174  ;;  %v297_v20 = vmax.f32 %v295_v0, %v296_v9  ;;  %v349_v21 = vmax.f32 %v347_v13, %v348_v12  ;;  %v290_v27 = vmax.f32 %v288_v5, %v289_v14  ;;  %v281_v28 = vmax.f32 %v279_v6, %v280_v15 }
  0x92   :  { %v261_v22 = vadd.f32 %v1693_v50, %v1668_v38  ;;  %v260_v23 = vadd.f32 %v1695_v51, %v1677_v41 }
  0x93   :  { %v298_v31 = vrot.slane %v297_v20, 2  ;;  %v350_v32 = vrot.slane %v349_v21, 4  ;;  %v291_v57 = vrot.slane %v290_v27, 1  ;;  %v282_v60 = vrot.slane %v281_v28, 1 }
  0x94   :  { %v357_v33 = vsel %vm274_vm1, %v261_v22, -inf  ;;  %v356_v42 = vsel %vm274_vm1, %v260_v23, -inf }
  0x95   :  { %v1703_v58 = vpop.permute.xlu1 %119  ;;  %v1705_v59 = vpop.permute.xlu0 %114  ;;  %v299_v63 = vmax.f32 %v297_v20, %v298_v31  ;;  %v351_v0 = vmax.f32 %v349_v21, %v350_v32  ;;  %v358_v3 = vmax.f32 %v356_v42, %v357_v33 }
  0x96   :  { %v249_v7 = vadd.f32 %v1703_v58, %v1668_v38  ;;  %v248_v8 = vadd.f32 %v1705_v59, %v1677_v41 }
  0x97   :  { %v352_v20 = vrot.slane %v351_v0, 2 }
  0x98   :  { %v303_v16 = vsel %vm274_vm1, %v249_v7, -inf  ;;  %v302_v17 = vsel %vm274_vm1, %v248_v8, -inf }
  0x99   :  { %v1709_v1 = vpop.permute.xlu1 %189  ;;  %v1711_v2 = vpop.permute.xlu0 %184  ;;  %v304_v26 = vmax.f32 %v302_v17, %v303_v16  ;;  %v292_v17 = vmax.f32 %v290_v27, %v291_v57 }
  0x9a   :  { %v263_v47 = vadd.f32 %v1709_v1, %v1668_v38  ;;  %v262_v48 = vadd.f32 %v1711_v2, %v1677_v41 }
  0x9b   :  { %v305_v53 = vrot.slane %v304_v26, 4 }
  0x9c   :  { %v366_v7 = vsel %vm274_vm1, %v263_v47, -inf  ;;  %v365_v8 = vsel %vm274_vm1, %v262_v48, -inf }
  0x9d   :  { %v1721_v10 = vpop.permute.xlu1 %129  ;;  %v1723_v11 = vpop.permute.xlu0 %124  ;;  %v306_v13 = vmax.f32 %v304_v26, %v305_v53  ;;  %v367_v21 = vmax.f32 %v365_v8, %v366_v7  ;;  %v359_v26 = vrot.slane %v358_v3, 4  ;;  %v1787_v53 = vmax.f32 %v351_v0, %v352_v20 }
  0x9e   :  { %v251_v18 = vadd.f32 %v1721_v10, %v1668_v38  ;;  %v250_v19 = vadd.f32 %v1723_v11, %v1677_v41 }
  0x9f   :  { %v307_v33 = vrot.slane %v306_v13, 2 }
  0xa0   :  { %v312_v29 = vsel %vm274_vm1, %v251_v18, -inf  ;;  %v311_v30 = vsel %vm274_vm1, %v250_v19, -inf  ;;  %v283_v18 = vmax.f32 %v281_v28, %v282_v60  ;;  %v300_v28 = vrot.slane %v299_v63, 1 }
  0xa1   :  { %v1737_v24 = vpop.permute.xlu1 %199  ;;  %v1739_v25 = vpop.permute.xlu0 %194  ;;  %v313_v54 = vmax.f32 %v311_v30, %v312_v29 }
  0xa2   :  { %v265_v55 = vadd.f32 %v1737_v24, %v1668_v38  ;;  %v264_v56 = vadd.f32 %v1739_v25, %v1677_v41  ;;  %v301_v8 = vmax.f32 %v299_v63, %v300_v28 }
  0xa3   :  { %v314_v14 = vrot.slane %v313_v54, 4 }
  0xa4   :  { %v375_v15 = vsel %vm274_vm1, %v265_v55, -inf  ;;  %v374_v16 = vsel %vm274_vm1, %v264_v56, -inf  ;;  %v368_v55 = vrot.slane %v367_v21, 4 }
  0xa5   :  { %v1745_v43 = vpop.permute.xlu1 %139  ;;  %v1747_v46 = vpop.permute.xlu0 %134  ;;  %v376_v31 = vmax.f32 %v374_v16, %v375_v15  ;;  %v315_v42 = vmax.f32 %v313_v54, %v314_v14 }
  0xa6   :  { %v253_v49 = vadd.f32 %v1745_v43, %v1668_v38  ;;  %v252_v52 = vadd.f32 %v1747_v46, %v1677_v41 }
  0xa7   :  { %v377_v7 = vrot.slane %v376_v31, 4  ;;  %v316_v0 = vrot.slane %v315_v42, 2 }
  0xa8   :  { %v321_v61 = vsel %vm274_vm1, %v253_v49, -inf  ;;  %v320_v62 = vsel %vm274_vm1, %v252_v52, -inf }
  0xa9   :  { %v322_v4 = vmax.f32 %v320_v62, %v321_v61  ;;  %v1763_v5 = vpop.permute.xlu1 %209  ;;  %v1765_v6 = vpop.permute.xlu0 %204  ;;  %v436_v61 = vsel %vm435_vm2, %v292_v17, %v283_v18  ;;  %v360_v62 = vmax.f32 %v358_v3, %v359_v26  ;;  %v369_v3 = vmax.f32 %v367_v21, %v368_v55 }
  0xaa   :  { %2195 = vst [vmem:[#allocation5_spill] sm:$0xff] %v1763_v5  ;;  %2196 = vst [vmem:[#allocation6_spill] sm:$0xff] %v1765_v6  ;;  %v267_v9 = vadd.f32 %v1763_v5, %v1668_v38  ;;  %v266_v12 = vadd.f32 %v1765_v6, %v1677_v41  ;;  %v378_v63 = vmax.f32 %v376_v31, %v377_v7 }
  0xab   :  { %v323_v19 = vrot.slane %v322_v4, 4  ;;  %v361_v26 = vrot.slane %v360_v62, 2  ;;  %v317_v28 = vmax.f32 %v315_v42, %v316_v0 }
  0xac   :  { %v384_v22 = vsel %vm274_vm1, %v267_v9, -inf  ;;  %v383_v23 = vsel %vm274_vm1, %v266_v12, -inf  ;;  %v308_v9 = vmax.f32 %v306_v13, %v307_v33  ;;  %v379_v42 = vrot.slane %v378_v63, 2 }
  0xad   :  { %v1777_v29 = vpop.permute.xlu1 %149  ;;  %v1779_v30 = vpop.permute.xlu0 %144  ;;  %v324_v47 = vmax.f32 %v322_v4, %v323_v19  ;;  %v385_v48 = vmax.f32 %v383_v23, %v384_v22 }
  0xae   :  { %v255_v32 = vadd.f32 %v1777_v29, %v1668_v38  ;;  %v254_v27 = vadd.f32 %v1779_v30, %v1677_v41 }
  0xaf   :  { %v325_v14 = vrot.slane %v324_v47, 2  ;;  %v386_v15 = vrot.slane %v385_v48, 4 }
  0xb0   :  { %v330_v49 = vsel %vm274_vm1, %v255_v32, -inf  ;;  %v329_v52 = vsel %vm274_vm1, %v254_v27, -inf  ;;  %v309_v27 = vrot.slane %v308_v9, 1 }
  0xb1   :  { %v331_v56 = vmax.f32 %v329_v52, %v330_v49  ;;  %v1789_v57 = vpop.permute.xlu1 %219  ;;  %v1791_v60 = vpop.permute.xlu0 %214  ;;  %v326_v21 = vmax.f32 %v324_v47, %v325_v14  ;;  %v387_v52 = vmax.f32 %v385_v48, %v386_v15  ;;  %v362_v14 = vmax.f32 %v360_v62, %v361_v26 }
  0xb2   :  { %2197 = vst [vmem:[#allocation7_spill] sm:$0xff] %v1789_v57  ;;  %2198 = vst [vmem:[#allocation8_spill] sm:$0xff] %v1791_v60  ;;  %v269_v54 = vadd.f32 %v1789_v57, %v1668_v38  ;;  %v268_v4 = vadd.f32 %v1791_v60, %v1677_v41  ;;  %v310_v15 = vmax.f32 %v308_v9, %v309_v27 }
  0xb3   :  { %v332_v12 = vrot.slane %v331_v56, 4  ;;  %v363_v27 = vrot.slane %v362_v14, 1 }
  0xb4   :  { %v393_v16 = vsel %vm274_vm1, %v269_v54, -inf  ;;  %v392_v19 = vsel %vm274_vm1, %v268_v4, -inf  ;;  %v370_v54 = vrot.slane %v369_v3, 2 }
  0xb5   :  { %v333_v18 = vmax.f32 %v331_v56, %v332_v12  ;;  %v394_v20 = vmax.f32 %v392_v19, %v393_v16  ;;  %v1801_v22 = vpop.permute.xlu1 %159  ;;  %v1803_v23 = vpop.permute.xlu0 %154  ;;  %v438_v16 = vsel %vm437_vm3, %v301_v8, %v436_v61  ;;  %v318_v19 = vrot.slane %v317_v28, 1 }
  0xb6   :  { %v257_v13 = vadd.f32 %v1801_v22, %v1668_v38  ;;  %v256_v32 = vadd.f32 %v1803_v23, %v1677_v41  ;;  %v371_v8 = vmax.f32 %v369_v3, %v370_v54 }
  0xb7   :  { %v334_v33 = vrot.slane %v333_v18, 2  ;;  %v395_v49 = vrot.slane %v394_v20, 4 }
  0xb8   :  { %v339_v55 = vsel %vm274_vm1, %v257_v13, -inf  ;;  %v338_v56 = vsel %vm274_vm1, %v256_v32, -inf  ;;  %v327_v13 = vrot.slane %v326_v21, 1  ;;  %v388_v32 = vrot.slane %v387_v52, 2 }
  0xb9   :  { %v396_v31 = vmax.f32 %v394_v20, %v395_v49  ;;  %v340_v7 = vmax.f32 %v338_v56, %v339_v55  ;;  %v1811_v4 = vpop.permute.xlu1 %229  ;;  %v1813_v12 = vpop.permute.xlu0 %224  ;;  %v335_v0 = vmax.f32 %v333_v18, %v334_v33  ;;  %v372_v57 = vrot.slane %v371_v8, 1 }
  0xba   :  { %2199 = vst [vmem:[#allocation9_spill] sm:$0xff] %v1811_v4  ;;  %2200 = vst [vmem:[#allocation10_spill] sm:$0xff] %v1813_v12  ;;  %v271_v47 = vadd.f32 %v1811_v4, %v1668_v38  ;;  %v270_v48 = vadd.f32 %v1813_v12, %v1677_v41  ;;  %v380_v4 = vmax.f32 %v378_v63, %v379_v42 }
  0xbb   :  { %v341_v20 = vrot.slane %v340_v7, 4  ;;  %v397_v55 = vrot.slane %v396_v31, 2  ;;  %v336_v26 = vrot.slane %v335_v0, 1  ;;  %v389_v3 = vmax.f32 %v387_v52, %v388_v32 }
  0xbc   :  { %v402_v49 = vsel %vm274_vm1, %v271_v47, -inf  ;;  %v401_v61 = vsel %vm274_vm1, %v270_v48, -inf  ;;  %v319_v47 = vmax.f32 %v317_v28, %v318_v19  ;;  %v364_v52 = vmax.f32 %v362_v14, %v363_v27 }
  0xbd   :  { %v342_v18 = vmax.f32 %v340_v7, %v341_v20  ;;  %v403_v33 = vmax.f32 %v401_v61, %v402_v49  ;;  %v1822_v56 = vpop.permute.xlu1 %239  ;;  %v1824_v17 = vpop.permute.xlu0 %234  ;;  %v328_v20 = vmax.f32 %v326_v21, %v327_v13  ;;  %v398_v49 = vmax.f32 %v396_v31, %v397_v55 }
  0xbe   :  { %2201 = vst [vmem:[#allocation11_spill] sm:$0xff] %v1822_v56  ;;  %2202 = vst [vmem:[#allocation12_spill] sm:$0xff] %v1824_v17  ;;  %v273_v62 = vadd.f32 %v1822_v56, %v1668_v38  ;;  %v272_v9 = vadd.f32 %v1824_v17, %v1677_v41  ;;  %v381_v56 = vrot.slane %v380_v4, 1  ;;  %v337_v60 = vmax.f32 %v335_v0, %v336_v26 }
  0xbf   :  { %v343_v12 = vrot.slane %v342_v18, 2  ;;  %v404_v48 = vrot.slane %v403_v33, 4  ;;  %v440_v17 = vsel %vm439_vm4, %v310_v15, %v438_v16  ;;  %v390_v32 = vrot.slane %v389_v3, 1 }
  0xc0   :  { %v411_v54 = vsel %vm274_vm1, %v273_v62, -inf  ;;  %v410_v7 = vsel %vm274_vm1, %v272_v9, -inf  ;;  %v442_v19 = vsel %vm441_vm5, %v319_v47, %v440_v17  ;;  %v399_v21 = vrot.slane %v398_v49, 1 }
  0xc1   :  { %v405_v61 = vmax.f32 %v403_v33, %v404_v48  ;;  %v412_v63 = vmax.f32 %v410_v7, %v411_v54  ;;  %v344_v42 = vmax.f32 %v342_v18, %v343_v12  ;;  %v444_v62 = vsel %vm443_vm6, %v328_v20, %v442_v19  ;;  %v1345_v54 = vld [vmem:[%s2167_s3] ss:$0 sm:$0xff] }
  0xc2   :  { %v2203_v12 = vrot.slane %v1787_v53, 1  ;;  %v373_v18 = vmax.f32 %v371_v8, %v372_v57  ;;  %v446_v16 = vsel %vm445_vm7, %v337_v60, %v444_v62  ;;  %v382_v15 = vmax.f32 %v380_v4, %v381_v56 }
  0xc3   :  { %v406_v5 = vrot.slane %v405_v61, 2  ;;  %v413_v6 = vrot.slane %v412_v63, 4  ;;  %v345_v28 = vrot.slane %v344_v42, 1  ;;  %v391_v14 = vmax.f32 %v389_v3, %v390_v32 }
  0xc4   :  { %v355_v0 = vmax.f32 %v1787_v53, %v2203_v12  ;;  %v821_v12 = vld [vmem:[%s2170_s6] sm:$0xff] }
  0xc5   :  { %v407_v31 = vmax.f32 %v405_v61, %v406_v5  ;;  %v414_v13 = vmax.f32 %v412_v63, %v413_v6  ;;  %v346_v55 = vmax.f32 %v344_v42, %v345_v28  ;;  %v400_v5 = vmax.f32 %v398_v49, %v399_v21 }
  0xc6   :  { %v449_v27 = vsel %vm435_vm2, %v364_v52, %v355_v0  ;;  %v822_v0 = vld [vmem:[%s2170_s6 + $0x8] sm:$0xff] }
  0xc7   :  { %v408_v33 = vrot.slane %v407_v31, 1  ;;  %v415_v9 = vrot.slane %v414_v13, 2  ;;  %v448_v17 = vsel %vm447_vm8, %v346_v55, %v446_v16  ;;  %v450_v47 = vsel %vm437_vm3, %v373_v18, %v449_v27  ;;  %v823_v18 = vld [vmem:[%s2170_s6 + $0x10] sm:$0xff] }
  0xc8   :  { %v458_v26 = vadd.f32 %v448_v17, %v1677_v41  ;;  %v451_v53 = vsel %vm439_vm4, %v382_v15, %v450_v47  ;;  %v1409_v16 = vpack.c.bf16 %v822_v0, %v821_v12  ;;  %v824_v15 = vld [vmem:[%s2170_s6 + $0x18] sm:$0xff]  ;;  %v1349_v47 = vld [vmem:[%s2168_s4] ss:$0 sm:$0xff] }
  0xc9   :  { %v416_v6 = vmax.f32 %v414_v13, %v415_v9  ;;  %v409_v48 = vmax.f32 %v407_v31, %v408_v33  ;;  %v452_v60 = vsel %vm441_vm5, %v391_v14, %v451_v53  ;;  %v1413_v33 = vpack.c.bf16 %v824_v15, %v823_v18  ;;  %v1350_v53 = vld [vmem:[%s2169_s5] ss:$0 sm:$0xff] }
  0xca   :  { %1384 = vmatprep.mubr.msk.f32.mxu0 %vm274_vm1, %v458_v26  ;;  %v453_v8 = vsel %vm443_vm6, %v400_v5, %v452_v60  ;;  %1410 = vmatprep.subr.bf16.mxu1 %v1409_v16 }
  0xcb   :  { %v417_v57 = vrot.slane %v416_v6, 1  ;;  %v454_v56 = vsel %vm445_vm7, %v409_v48, %v453_v8  ;;  %1412 = vmatpush3.bf16.msra.mxu1 %v1409_v16 }
  0xcc   :  { %1414 = vmatprep.subr.bf16.mxu1 %v1413_v33 }
  0xcd   :  { %v418_v4 = vmax.f32 %v416_v6, %v417_v57 }
  0xcf   :  { %v455_v41 = vsel %vm447_vm8, %v418_v4, %v454_v56  ;;  %1416 = vmatpush3.bf16.msra.mxu1 %v1413_v33 }
  0xd0   :  { %v459_v3 = vadd.f32 %v455_v41, %v1668_v38 }
  0xd2   :  { %1385 = vmatmul.mubr.msk.f32.vlgmr.msra.gmra.mrb[0].mxu0 %vm274_vm1, %v459_v3 }
 0x1a5   :  { %v1386_v7 = vpop.f32.mrb[0].mxu0 }
 0x1a6   :  { %v550_v20 = vadd.f32 %v1386_v7, %v1345_v54  ;;  %v544_v49 = vpop.f32.mrb[1].mxu0 }
 0x1a7   :  { %v545_v61 = vadd.f32 %v1345_v54, %v544_v49 }
 0x1a8   :  { %v557_v63 = vsel %vm553_vm9, %v550_v20, 0.0 }
 0x1a9   :  { %558 = vadd.xlane.f32.xlu1 %v557_v63  ;;  %v554_v42 = vsel %vm553_vm9, %v545_v61, 0.0 }
 0x1aa   :  { %555 = vadd.xlane.f32.xlu0 %v554_v42 }
 0x236   :  { %v559_v28 = vpop.xlane.xlu1 %558 }
 0x237   :  { %v562_v19 = vmul.f32 0.03125, %v559_v28  ;;  %v556_v38 = vpop.xlane.xlu0 %555 }
 0x238   :  { %v561_v52 = vmul.f32 0.03125, %v556_v38 }
 0x239   :  { %v564_v32 = vsub.f32 %v550_v20, %v562_v19 }
 0x23a   :  { %v563_v62 = vsub.f32 %v545_v61, %v561_v52 }
 0x23b   :  { %v566_v13 = vmul.f32 %v564_v32, %v564_v32 }
 0x23c   :  { %v565_v21 = vmul.f32 %v563_v62, %v563_v62 }
 0x23d   :  { %v570_v55 = vsel %vm553_vm9, %v566_v13, 0.0 }
 0x23e   :  { %v567_v31 = vsel %vm553_vm9, %v565_v21, 0.0 }
 0x23f   :  { %568 = vadd.xlane.f32.xlu0 %v567_v31 }
 0x243   :  { %571 = vadd.xlane.f32.xlu0 %v570_v55 }
 0x2cc   :  { %v569_v9 = vpop.xlane.xlu0 %568 }
 0x2cd   :  { %v573_v17 = vmul.f32 0.03125, %v569_v9 }
 0x2cf   :  { %v575_v14 = vadd.f32 1e-05, %v573_v17 }
 0x2d0   :  { %v572_v26 = vpop.xlane.xlu0 %571 }
 0x2d1   :  { %1431 = vrsqrt.f32 %v575_v14  ;;  %v574_v27 = vmul.f32 0.03125, %v572_v26 }
 0x2d3   :  { %v576_v5 = vadd.f32 1e-05, %v574_v27 }
 0x2d5   :  { %1433 = vrsqrt.f32 %v576_v5 }
 0x2db   :  { %v1432_v6 = vpop.eup %1431 }
 0x2dc   :  { %v579_v48 = vmul.f32 %v1432_v6, %v563_v62 }
 0x2de   :  { %v588_v57 = vmul.f32 %v1349_v47, %v579_v48 }
 0x2df   :  { %v1434_v60 = vpop.eup %1433 }
 0x2e0   :  { %v597_v4 = vadd.f32 %v1350_v53, %v588_v57  ;;  %v580_v8 = vmul.f32 %v1434_v60, %v564_v32 }
 0x2e2   :  { %v601_v56 = vmin.f32 %v597_v4, 0.0  ;;  %v589_v41 = vmul.f32 %v1349_v47, %v580_v8  ;;  %vm599_vm10 = vcmp.gt.f32.partialorder %v597_v4, 0.0 }
 0x2e4   :  { %v603_v3 = vmul.f32 1.442695, %v601_v56  ;;  %v598_v54 = vadd.f32 %v1350_v53, %v589_v41 }
 0x2e6   :  { %1435 = vpow2.f32 %v603_v3  ;;  %v602_v7 = vmin.f32 %v598_v54, 0.0  ;;  %vm600_vm11 = vcmp.gt.f32.partialorder %v598_v54, 0.0 }
 0x2e8   :  { %v605_v20 = vmul.f32 1.442695, %v602_v7 }
 0x2ea   :  { %1437 = vpow2.f32 %v605_v20 }
 0x2f0   :  { %v1436_v49 = vpop.eup %1435 }
 0x2f1   :  { %v1351_v61 = vadd.f32 -1.0, %v1436_v49 }
 0x2f3   :  { %v1876_v63 = vsel %vm599_vm10, %v597_v4, %v1351_v61 }
 0x2f4   :  { %v1438_v42 = vpop.eup %1437  ;;  %v611_v28 = vadd.f32 %v1876_v63, %v1659_v35  ;;  %v613_v19 = vadd.f32 %v1876_v63, %v1657_v34  ;;  %v615_v38 = vadd.f32 %v1876_v63, %v1672_v40  ;;  %v617_v52 = vadd.f32 %v1876_v63, %v1705_v59 }
 0x2f5   :  { %v1352_v32 = vadd.f32 -1.0, %v1438_v42  ;;  %v619_v62 = vadd.f32 %v1876_v63, %v1723_v11  ;;  %v621_v21 = vadd.f32 %v1876_v63, %v1747_v46  ;;  %v623_v31 = vadd.f32 %v1876_v63, %v1779_v30 }
 0x2f6   :  { %v625_v13 = vadd.f32 %v1876_v63, %v1803_v23  ;;  %v643_v55 = vsel %vm553_vm9, %v611_v28, -inf  ;;  %v652_v12 = vsel %vm553_vm9, %v613_v19, -inf  ;;  %v661_v0 = vsel %vm553_vm9, %v615_v38, -inf }
 0x2f7   :  { %v1897_v18 = vsel %vm600_vm11, %v598_v54, %v1352_v32  ;;  %v670_v16 = vsel %vm553_vm9, %v617_v52, -inf  ;;  %v679_v15 = vsel %vm553_vm9, %v619_v62, -inf  ;;  %v688_v33 = vsel %vm553_vm9, %v621_v21, -inf }
 0x2f8   :  { %v612_v9 = vadd.f32 %v1897_v18, %v1663_v37  ;;  %v614_v17 = vadd.f32 %v1897_v18, %v1661_v36  ;;  %v616_v14 = vadd.f32 %v1897_v18, %v1670_v39  ;;  %v618_v26 = vadd.f32 %v1897_v18, %v1703_v58 }
 0x2f9   :  { %v620_v27 = vadd.f32 %v1897_v18, %v1721_v10  ;;  %v622_v5 = vadd.f32 %v1897_v18, %v1745_v43  ;;  %v624_v6 = vadd.f32 %v1897_v18, %v1777_v29  ;;  %v626_v47 = vadd.f32 %v1897_v18, %v1801_v22 }
 0x2fa   :  { %v644_v48 = vsel %vm553_vm9, %v612_v9, -inf  ;;  %v653_v53 = vsel %vm553_vm9, %v614_v17, -inf  ;;  %v662_v57 = vsel %vm553_vm9, %v616_v14, -inf  ;;  %v671_v60 = vsel %vm553_vm9, %v618_v26, -inf }
 0x2fb   :  { %v645_v4 = vmax.f32 %v643_v55, %v644_v48  ;;  %v654_v8 = vmax.f32 %v652_v12, %v653_v53  ;;  %v663_v56 = vmax.f32 %v661_v0, %v662_v57  ;;  %v672_v41 = vmax.f32 %v670_v16, %v671_v60 }
 0x2fc   :  { %v680_v3 = vsel %vm553_vm9, %v620_v27, -inf  ;;  %v689_v54 = vsel %vm553_vm9, %v622_v5, -inf  ;;  %v697_v7 = vsel %vm553_vm9, %v623_v31, -inf  ;;  %v698_v20 = vsel %vm553_vm9, %v624_v6, -inf }
 0x2fd   :  { %v646_v49 = vrot.slane %v645_v4, 4  ;;  %v655_v61 = vrot.slane %v654_v8, 4  ;;  %v664_v42 = vrot.slane %v663_v56, 4  ;;  %v673_v28 = vrot.slane %v672_v41, 4 }
 0x2fe   :  { %v681_v19 = vmax.f32 %v679_v15, %v680_v3  ;;  %v690_v38 = vmax.f32 %v688_v33, %v689_v54  ;;  %v699_v52 = vmax.f32 %v697_v7, %v698_v20  ;;  %v706_v32 = vsel %vm553_vm9, %v625_v13, -inf }
 0x2ff   :  { %v647_v62 = vmax.f32 %v645_v4, %v646_v49  ;;  %v656_v21 = vmax.f32 %v654_v8, %v655_v61  ;;  %v665_v55 = vmax.f32 %v663_v56, %v664_v42  ;;  %v674_v12 = vmax.f32 %v672_v41, %v673_v28 }
 0x300   :  { %v682_v0 = vrot.slane %v681_v19, 4  ;;  %v691_v16 = vrot.slane %v690_v38, 4  ;;  %v700_v9 = vrot.slane %v699_v52, 4  ;;  %v707_v31 = vsel %vm553_vm9, %v626_v47, -inf }
 0x301   :  { %v648_v17 = vrot.slane %v647_v62, 2  ;;  %v657_v14 = vrot.slane %v656_v21, 2  ;;  %v666_v26 = vrot.slane %v665_v55, 2  ;;  %v675_v27 = vrot.slane %v674_v12, 2 }
 0x302   :  { %v683_v5 = vmax.f32 %v681_v19, %v682_v0  ;;  %v692_v6 = vmax.f32 %v690_v38, %v691_v16  ;;  %v701_v15 = vmax.f32 %v699_v52, %v700_v9  ;;  %v708_v33 = vmax.f32 %v706_v32, %v707_v31 }
 0x303   :  { %v649_v48 = vmax.f32 %v647_v62, %v648_v17  ;;  %v658_v53 = vmax.f32 %v656_v21, %v657_v14  ;;  %v667_v13 = vmax.f32 %v665_v55, %v666_v26  ;;  %v676_v57 = vmax.f32 %v674_v12, %v675_v27 }
 0x304   :  { %v684_v60 = vrot.slane %v683_v5, 2  ;;  %v693_v4 = vrot.slane %v692_v6, 2  ;;  %v702_v8 = vrot.slane %v701_v15, 2  ;;  %v709_v56 = vrot.slane %v708_v33, 4 }
 0x305   :  { %v650_v41 = vrot.slane %v649_v48, 1  ;;  %v659_v3 = vrot.slane %v658_v53, 1  ;;  %v668_v54 = vrot.slane %v667_v13, 1  ;;  %v677_v47 = vrot.slane %v676_v57, 1 }
 0x306   :  { %v685_v7 = vmax.f32 %v683_v5, %v684_v60  ;;  %v694_v20 = vmax.f32 %v692_v6, %v693_v4  ;;  %v703_v49 = vmax.f32 %v701_v15, %v702_v8  ;;  %v710_v61 = vmax.f32 %v708_v33, %v709_v56  ;;  %v2205_v4 = vld [vmem:[#allocation5_spill] sm:$0xff]  ;;  %v2206_v56 = vld [vmem:[#allocation8_spill] sm:$0xff] }
 0x307   :  { %v651_v42 = vmax.f32 %v649_v48, %v650_v41  ;;  %v660_v28 = vmax.f32 %v658_v53, %v659_v3  ;;  %v669_v19 = vmax.f32 %v667_v13, %v668_v54  ;;  %v678_v38 = vmax.f32 %v676_v57, %v677_v47  ;;  %v2204_v57 = vld [vmem:[#allocation6_spill] sm:$0xff]  ;;  %v2207_v47 = vld [vmem:[#allocation7_spill] sm:$0xff] }
 0x308   :  { %v686_v52 = vrot.slane %v685_v7, 1  ;;  %v695_v32 = vrot.slane %v694_v20, 1  ;;  %v704_v62 = vrot.slane %v703_v49, 1  ;;  %v711_v21 = vrot.slane %v710_v61, 2 }
 0x309   :  { %v803_v55 = vsel %vm435_vm2, %v660_v28, %v651_v42  ;;  %v627_v12 = vadd.f32 %v1876_v63, %v1685_v45  ;;  %v628_v0 = vadd.f32 %v1897_v18, %v1683_v44  ;;  %v629_v16 = vadd.f32 %v1876_v63, %v1695_v51  ;;  %v2209_v42 = vld [vmem:[#allocation9_spill] sm:$0xff] }
 0x30a   :  { %v687_v9 = vmax.f32 %v685_v7, %v686_v52  ;;  %v696_v31 = vmax.f32 %v694_v20, %v695_v32  ;;  %v705_v17 = vmax.f32 %v703_v49, %v704_v62  ;;  %v712_v14 = vmax.f32 %v710_v61, %v711_v21  ;;  %v2208_v20 = vld [vmem:[#allocation10_spill] sm:$0xff]  ;;  %v2211_v52 = vld [vmem:[#allocation11_spill] sm:$0xff] }
 0x30b   :  { %v804_v26 = vsel %vm437_vm3, %v669_v19, %v803_v55  ;;  %v630_v27 = vadd.f32 %v1897_v18, %v1693_v50  ;;  %v631_v5 = vadd.f32 %v1876_v63, %v1711_v2  ;;  %v632_v6 = vadd.f32 %v1897_v18, %v1709_v1  ;;  %v2210_v19 = vld [vmem:[#allocation12_spill] sm:$0xff] }
 0x30c   :  { %v713_v15 = vrot.slane %v712_v14, 1  ;;  %v805_v33 = vsel %vm439_vm4, %v678_v38, %v804_v26  ;;  %v633_v48 = vadd.f32 %v1876_v63, %v1739_v25  ;;  %v634_v53 = vadd.f32 %v1897_v18, %v1737_v24 }
 0x30d   :  { %v806_v13 = vsel %vm441_vm5, %v687_v9, %v805_v33  ;;  %v635_v60 = vadd.f32 %v1876_v63, %v2204_v57  ;;  %v636_v8 = vadd.f32 %v1897_v18, %v2205_v4  ;;  %v637_v41 = vadd.f32 %v1876_v63, %v2206_v56 }
 0x30e   :  { %v714_v3 = vmax.f32 %v712_v14, %v713_v15  ;;  %v807_v54 = vsel %vm443_vm6, %v696_v31, %v806_v13  ;;  %v638_v7 = vadd.f32 %v1897_v18, %v2207_v47  ;;  %v639_v49 = vadd.f32 %v1876_v63, %v2208_v20 }
 0x30f   :  { %v808_v61 = vsel %vm445_vm7, %v705_v17, %v807_v54  ;;  %v640_v28 = vadd.f32 %v1897_v18, %v2209_v42  ;;  %v641_v38 = vadd.f32 %v1876_v63, %v2210_v19  ;;  %v642_v32 = vadd.f32 %v1897_v18, %v2211_v52 }
 0x310   :  { %v809_v62 = vsel %vm447_vm8, %v714_v3, %v808_v61  ;;  %v715_v21 = vsel %vm553_vm9, %v627_v12, -inf  ;;  %v716_v55 = vsel %vm553_vm9, %v628_v0, -inf  ;;  %v724_v9 = vsel %vm553_vm9, %v629_v16, -inf }
 0x311   :  { %v819_v31 = vadd.f32 %v809_v62, %v1876_v63  ;;  %v717_v17 = vmax.f32 %v715_v21, %v716_v55  ;;  %v725_v14 = vsel %vm553_vm9, %v630_v27, -inf  ;;  %v733_v26 = vsel %vm553_vm9, %v631_v5, -inf }
 0x312   :  { %v726_v15 = vmax.f32 %v724_v9, %v725_v14  ;;  %v734_v33 = vsel %vm553_vm9, %v632_v6, -inf  ;;  %v742_v13 = vsel %vm553_vm9, %v633_v48, -inf  ;;  %v743_v3 = vsel %vm553_vm9, %v634_v53, -inf }
 0x313   :  { %1395 = vmatprep.mubr.msk.f32.mxu1 %vm553_vm9, %v819_v31  ;;  %v718_v12 = vrot.slane %v717_v17, 4  ;;  %v735_v0 = vmax.f32 %v733_v26, %v734_v33  ;;  %v744_v54 = vmax.f32 %v742_v13, %v743_v3  ;;  %v751_v16 = vsel %vm553_vm9, %v635_v60, -inf }
 0x314   :  { %v727_v63 = vrot.slane %v726_v15, 4  ;;  %v752_v61 = vsel %vm553_vm9, %v636_v8, -inf  ;;  %v760_v27 = vsel %vm553_vm9, %v637_v41, -inf  ;;  %v761_v5 = vsel %vm553_vm9, %v638_v7, -inf }
 0x315   :  { %v719_v62 = vmax.f32 %v717_v17, %v718_v12  ;;  %v736_v6 = vrot.slane %v735_v0, 4  ;;  %v745_v21 = vrot.slane %v744_v54, 4  ;;  %v753_v48 = vmax.f32 %v751_v16, %v752_v61 }
 0x316   :  { %v728_v55 = vmax.f32 %v726_v15, %v727_v63  ;;  %v762_v53 = vmax.f32 %v760_v27, %v761_v5  ;;  %v769_v9 = vsel %vm553_vm9, %v639_v49, -inf  ;;  %v770_v31 = vsel %vm553_vm9, %v640_v28, -inf }
 0x317   :  { %v720_v14 = vrot.slane %v719_v62, 2  ;;  %v737_v26 = vmax.f32 %v735_v0, %v736_v6  ;;  %v746_v60 = vmax.f32 %v744_v54, %v745_v21  ;;  %v754_v33 = vrot.slane %v753_v48, 4 }
 0x318   :  { %v729_v13 = vrot.slane %v728_v55, 2  ;;  %v763_v8 = vrot.slane %v762_v53, 4  ;;  %v771_v3 = vmax.f32 %v769_v9, %v770_v31  ;;  %v778_v41 = vsel %vm553_vm9, %v641_v38, -inf }
 0x319   :  { %v721_v7 = vmax.f32 %v719_v62, %v720_v14  ;;  %v738_v17 = vrot.slane %v737_v26, 2  ;;  %v747_v12 = vrot.slane %v746_v60, 2  ;;  %v755_v52 = vmax.f32 %v753_v48, %v754_v33 }
 0x31a   :  { %v730_v16 = vmax.f32 %v728_v55, %v729_v13  ;;  %v764_v15 = vmax.f32 %v762_v53, %v763_v8  ;;  %v772_v63 = vrot.slane %v771_v3, 4  ;;  %v779_v49 = vsel %vm553_vm9, %v642_v32, -inf }
 0x31b   :  { %v722_v61 = vrot.slane %v721_v7, 1  ;;  %v739_v28 = vmax.f32 %v737_v26, %v738_v17  ;;  %v748_v27 = vmax.f32 %v746_v60, %v747_v12  ;;  %v756_v0 = vrot.slane %v755_v52, 2 }
 0x31c   :  { %v731_v54 = vrot.slane %v730_v16, 1  ;;  %v765_v5 = vrot.slane %v764_v15, 2  ;;  %v773_v6 = vmax.f32 %v771_v3, %v772_v63  ;;  %v780_v21 = vmax.f32 %v778_v41, %v779_v49 }
 0x31d   :  { %v723_v9 = vmax.f32 %v721_v7, %v722_v61  ;;  %v740_v31 = vrot.slane %v739_v28, 1  ;;  %v749_v38 = vrot.slane %v748_v27, 1  ;;  %v757_v62 = vmax.f32 %v755_v52, %v756_v0 }
 0x31e   :  { %v732_v14 = vmax.f32 %v730_v16, %v731_v54  ;;  %v766_v19 = vmax.f32 %v764_v15, %v765_v5  ;;  %v774_v48 = vrot.slane %v773_v6, 2  ;;  %v781_v55 = vrot.slane %v780_v21, 4 }
 0x31f   :  { %v741_v53 = vmax.f32 %v739_v28, %v740_v31  ;;  %v750_v33 = vmax.f32 %v748_v27, %v749_v38  ;;  %v758_v13 = vrot.slane %v757_v62, 1 }
 0x320   :  { %v767_v32 = vrot.slane %v766_v19, 1  ;;  %v775_v8 = vmax.f32 %v773_v6, %v774_v48  ;;  %v782_v26 = vmax.f32 %v780_v21, %v781_v55  ;;  %v810_v60 = vsel %vm435_vm2, %v732_v14, %v723_v9 }
 0x321   :  { %v759_v17 = vmax.f32 %v757_v62, %v758_v13  ;;  %v811_v3 = vsel %vm437_vm3, %v741_v53, %v810_v60  ;;  %v1180_v60 = vld [vmem:[%s2174_s10 + $0x8] sm:$0xff] }
 0x322   :  { %v768_v41 = vmax.f32 %v766_v19, %v767_v32  ;;  %v776_v7 = vrot.slane %v775_v8, 1  ;;  %v783_v12 = vrot.slane %v782_v26, 2  ;;  %v812_v52 = vsel %vm439_vm4, %v750_v33, %v811_v3  ;;  %v1353_v19 = vld [vmem:[%s2171_s7] ss:$0 sm:$0xff] }
 0x323   :  { %v813_v16 = vsel %vm441_vm5, %v759_v17, %v812_v52  ;;  %v1181_v17 = vld [vmem:[%s2174_s10 + $0x10] sm:$0xff] }
 0x324   :  { %v784_v15 = vmax.f32 %v782_v26, %v783_v12  ;;  %v814_v63 = vsel %vm443_vm6, %v768_v41, %v813_v16  ;;  %v777_v49 = vmax.f32 %v775_v8, %v776_v7  ;;  %v1179_v26 = vld [vmem:[%s2174_s10] sm:$0xff]  ;;  %v1182_v41 = vld [vmem:[%s2174_s10 + $0x18] sm:$0xff] }
 0x325   :  { %v1417_v3 = vpack.c.bf16 %v1180_v60, %v1179_v26  ;;  %v1421_v7 = vpack.c.bf16 %v1182_v41, %v1181_v17 }
 0x326   :  { %v785_v61 = vrot.slane %v784_v15, 1  ;;  %v815_v28 = vsel %vm445_vm7, %v777_v49, %v814_v63 }
 0x327   :  { %1418 = vmatprep.subr.bf16.mxu0 %v1417_v3 }
 0x328   :  { %v786_v27 = vmax.f32 %v784_v15, %v785_v61  ;;  %1420 = vmatpush3.bf16.msra.mxu0 %v1417_v3 }
 0x329   :  { %1422 = vmatprep.subr.bf16.mxu0 %v1421_v7 }
 0x32a   :  { %v816_v0 = vsel %vm447_vm8, %v786_v27, %v815_v28  ;;  %v1356_v28 = vld [vmem:[%s2172_s8] ss:$0 sm:$0xff] }
 0x32b   :  { %v820_v54 = vadd.f32 %v816_v0, %v1897_v18 }
 0x32c   :  { %1424 = vmatpush3.bf16.msra.mxu0 %v1421_v7 }
 0x32d   :  { %1396 = vmatmul.mubr.msk.f32.vlgmr.msra.gmra.mrb[0].mxu1 %vm553_vm9, %v820_v54  ;;  %v1357_v54 = vld [vmem:[%s2173_s9] ss:$0 sm:$0xff] }
 0x400   :  { %v1397_v5 = vpop.f32.mrb[0].mxu1 }
 0x401   :  { %v910_v6 = vadd.f32 %v1397_v5, %v1353_v19  ;;  %v904_v21 = vpop.f32.mrb[1].mxu1 }
 0x402   :  { %v905_v9 = vadd.f32 %v1353_v19, %v904_v21 }
 0x403   :  { %v916_v31 = vsel %vm553_vm9, %v910_v6, 0.0 }
 0x404   :  { %917 = vadd.xlane.f32.xlu0 %v916_v31  ;;  %v913_v38 = vsel %vm553_vm9, %v905_v9, 0.0 }
 0x405   :  { %914 = vadd.xlane.f32.xlu1 %v913_v38 }
 0x491   :  { %v918_v62 = vpop.xlane.xlu0 %917 }
 0x492   :  { %v920_v14 = vmul.f32 0.03125, %v918_v62  ;;  %v915_v48 = vpop.xlane.xlu1 %914 }
 0x493   :  { %v919_v18 = vmul.f32 0.03125, %v915_v48 }
 0x494   :  { %v922_v55 = vsub.f32 %v910_v6, %v920_v14 }
 0x495   :  { %v921_v53 = vsub.f32 %v905_v9, %v919_v18 }
 0x496   :  { %v924_v33 = vmul.f32 %v922_v55, %v922_v55 }
 0x497   :  { %v923_v13 = vmul.f32 %v921_v53, %v921_v53 }
 0x498   :  { %v928_v32 = vsel %vm553_vm9, %v924_v33, 0.0 }
 0x499   :  { %929 = vadd.xlane.f32.xlu0 %v928_v32  ;;  %v925_v8 = vsel %vm553_vm9, %v923_v13, 0.0 }
 0x49a   :  { %926 = vadd.xlane.f32.xlu1 %v925_v8 }
 0x526   :  { %v930_v12 = vpop.xlane.xlu0 %929 }
 0x527   :  { %v932_v52 = vmul.f32 0.03125, %v930_v12  ;;  %v927_v16 = vpop.xlane.xlu1 %926 }
 0x528   :  { %v931_v15 = vmul.f32 0.03125, %v927_v16 }
 0x529   :  { %v934_v63 = vadd.f32 1e-05, %v932_v52 }
 0x52a   :  { %v933_v49 = vadd.f32 1e-05, %v931_v15 }
 0x52b   :  { %1439 = vrsqrt.f32 %v934_v63 }
 0x52c   :  { %1441 = vrsqrt.f32 %v933_v49 }
 0x535   :  { %v1440_v61 = vpop.eup %1439 }
 0x536   :  { %v1442_v27 = vpop.eup %1441  ;;  %v938_v0 = vmul.f32 %v1440_v61, %v922_v55 }
 0x537   :  { %v937_v19 = vmul.f32 %v1442_v27, %v921_v53 }
 0x538   :  { %v947_v5 = vmul.f32 %v1356_v28, %v938_v0 }
 0x539   :  { %v946_v6 = vmul.f32 %v1356_v28, %v937_v19 }
 0x53a   :  { %v956_v21 = vadd.f32 %v1357_v54, %v947_v5 }
 0x53b   :  { %v955_v9 = vadd.f32 %v1357_v54, %v946_v6 }
 0x53c   :  { %v960_v31 = vmin.f32 %v956_v21, 0.0  ;;  %vm958_vm12 = vcmp.gt.f32.partialorder %v956_v21, 0.0 }
 0x53d   :  { %v959_v38 = vmin.f32 %v955_v9, 0.0  ;;  %vm957_vm13 = vcmp.gt.f32.partialorder %v955_v9, 0.0 }
 0x53e   :  { %v963_v62 = vmul.f32 1.442695, %v960_v31 }
 0x53f   :  { %v961_v14 = vmul.f32 1.442695, %v959_v38 }
 0x540   :  { %1443 = vpow2.f32 %v963_v62 }
 0x541   :  { %1445 = vpow2.f32 %v961_v14 }
 0x54a   :  { %v1444_v48 = vpop.eup %1443 }
 0x54b   :  { %v1446_v18 = vpop.eup %1445  ;;  %v1359_v33 = vadd.f32 -1.0, %v1444_v48 }
 0x54c   :  { %v1358_v55 = vadd.f32 -1.0, %v1446_v18 }
 0x54d   :  { %v2019_v13 = vsel %vm958_vm12, %v956_v21, %v1359_v33 }
 0x54e   :  { %v2021_v32 = vsel %vm957_vm13, %v955_v9, %v1358_v55  ;;  %v970_v53 = vadd.f32 %v2019_v13, %v1663_v37  ;;  %v972_v8 = vadd.f32 %v2019_v13, %v1661_v36  ;;  %v974_v26 = vadd.f32 %v2019_v13, %v1670_v39 }
 0x54f   :  { %v969_v60 = vadd.f32 %v2021_v32, %v1659_v35  ;;  %v971_v17 = vadd.f32 %v2021_v32, %v1657_v34  ;;  %v973_v3 = vadd.f32 %v2021_v32, %v1672_v40  ;;  %v975_v41 = vadd.f32 %v2021_v32, %v1705_v59 }
 0x550   :  { %v976_v37 = vadd.f32 %v2019_v13, %v1703_v58  ;;  %v977_v36 = vadd.f32 %v2021_v32, %v1723_v11  ;;  %v978_v39 = vadd.f32 %v2019_v13, %v1721_v10  ;;  %v979_v35 = vadd.f32 %v2021_v32, %v1747_v46 }
 0x551   :  { %v980_v34 = vadd.f32 %v2019_v13, %v1745_v43  ;;  %v981_v40 = vadd.f32 %v2021_v32, %v1779_v30  ;;  %v982_v59 = vadd.f32 %v2019_v13, %v1777_v29  ;;  %v983_v58 = vadd.f32 %v2021_v32, %v1803_v23 }
 0x552   :  { %v984_v11 = vadd.f32 %v2019_v13, %v1801_v22  ;;  %v1001_v10 = vsel %vm553_vm9, %v969_v60, -inf  ;;  %v1002_v7 = vsel %vm553_vm9, %v970_v53, -inf  ;;  %v1010_v46 = vsel %vm553_vm9, %v971_v17, -inf }
 0x553   :  { %v1003_v12 = vmax.f32 %v1001_v10, %v1002_v7  ;;  %v1011_v43 = vsel %vm553_vm9, %v972_v8, -inf  ;;  %v1019_v30 = vsel %vm553_vm9, %v973_v3, -inf  ;;  %v1020_v52 = vsel %vm553_vm9, %v974_v26, -inf }
 0x554   :  { %v1012_v29 = vmax.f32 %v1010_v46, %v1011_v43  ;;  %v1021_v16 = vmax.f32 %v1019_v30, %v1020_v52  ;;  %v1028_v23 = vsel %vm553_vm9, %v975_v41, -inf  ;;  %v1029_v15 = vsel %vm553_vm9, %v976_v37, -inf }
 0x555   :  { %v1004_v22 = vrot.slane %v1003_v12, 4  ;;  %v1030_v63 = vmax.f32 %v1028_v23, %v1029_v15  ;;  %v1037_v49 = vsel %vm553_vm9, %v977_v36, -inf  ;;  %v1038_v61 = vsel %vm553_vm9, %v978_v39, -inf }
 0x556   :  { %v1013_v28 = vrot.slane %v1012_v29, 4  ;;  %v1022_v27 = vrot.slane %v1021_v16, 4  ;;  %v1039_v0 = vmax.f32 %v1037_v49, %v1038_v61  ;;  %v1046_v54 = vsel %vm553_vm9, %v979_v35, -inf }
 0x557   :  { %v1005_v19 = vmax.f32 %v1003_v12, %v1004_v22  ;;  %v1031_v5 = vrot.slane %v1030_v63, 4  ;;  %v1047_v6 = vsel %vm553_vm9, %v980_v34, -inf  ;;  %v1055_v21 = vsel %vm553_vm9, %v981_v40, -inf }
 0x558   :  { %v1014_v9 = vmax.f32 %v1012_v29, %v1013_v28  ;;  %v1023_v31 = vmax.f32 %v1021_v16, %v1022_v27  ;;  %v1040_v38 = vrot.slane %v1039_v0, 4  ;;  %v1048_v62 = vmax.f32 %v1046_v54, %v1047_v6 }
 0x559   :  { %v1006_v14 = vrot.slane %v1005_v19, 2  ;;  %v1032_v48 = vmax.f32 %v1030_v63, %v1031_v5  ;;  %v1056_v18 = vsel %vm553_vm9, %v982_v59, -inf  ;;  %v1064_v33 = vsel %vm553_vm9, %v983_v58, -inf }
 0x55a   :  { %v1015_v55 = vrot.slane %v1014_v9, 2  ;;  %v1024_v53 = vrot.slane %v1023_v31, 2  ;;  %v1041_v8 = vmax.f32 %v1039_v0, %v1040_v38  ;;  %v1049_v26 = vrot.slane %v1048_v62, 4 }
 0x55b   :  { %v1007_v60 = vmax.f32 %v1005_v19, %v1006_v14  ;;  %v1033_v17 = vrot.slane %v1032_v48, 2  ;;  %v1057_v3 = vmax.f32 %v1055_v21, %v1056_v18  ;;  %v1065_v41 = vsel %vm553_vm9, %v984_v11, -inf }
 0x55c   :  { %v1016_v37 = vmax.f32 %v1014_v9, %v1015_v55  ;;  %v1025_v36 = vmax.f32 %v1023_v31, %v1024_v53  ;;  %v1042_v39 = vrot.slane %v1041_v8, 2  ;;  %v1050_v35 = vmax.f32 %v1048_v62, %v1049_v26  ;;  %v2212_v26 = vld [vmem:[#allocation12_spill] sm:$0xff] }
 0x55d   :  { %v1008_v34 = vrot.slane %v1007_v60, 1  ;;  %v1034_v40 = vmax.f32 %v1032_v48, %v1033_v17  ;;  %v1058_v10 = vrot.slane %v1057_v3, 4  ;;  %v1066_v7 = vmax.f32 %v1064_v33, %v1065_v41 }
 0x55e   :  { %v1017_v59 = vrot.slane %v1016_v37, 1  ;;  %v1026_v46 = vrot.slane %v1025_v36, 1  ;;  %v1043_v58 = vmax.f32 %v1041_v8, %v1042_v39  ;;  %v1051_v12 = vrot.slane %v1050_v35, 2 }
 0x55f   :  { %v1009_v43 = vmax.f32 %v1007_v60, %v1008_v34  ;;  %v1035_v30 = vrot.slane %v1034_v40, 1  ;;  %v1059_v52 = vmax.f32 %v1057_v3, %v1058_v10  ;;  %v1067_v29 = vrot.slane %v1066_v7, 4  ;;  %v2213_v3 = vld [vmem:[#allocation11_spill] sm:$0xff] }
 0x560   :  { %v1018_v16 = vmax.f32 %v1016_v37, %v1017_v59  ;;  %v1027_v23 = vmax.f32 %v1025_v36, %v1026_v46  ;;  %v1044_v15 = vrot.slane %v1043_v58, 1  ;;  %v1052_v11 = vmax.f32 %v1050_v35, %v1051_v12 }
 0x561   :  { %v1036_v22 = vmax.f32 %v1034_v40, %v1035_v30  ;;  %v1060_v63 = vrot.slane %v1059_v52, 2  ;;  %v1068_v49 = vmax.f32 %v1066_v7, %v1067_v29  ;;  %v985_v61 = vadd.f32 %v2021_v32, %v1685_v45 }
 0x562   :  { %v1045_v28 = vmax.f32 %v1043_v58, %v1044_v15  ;;  %v1053_v27 = vrot.slane %v1052_v11, 1  ;;  %v1161_v0 = vsel %vm435_vm2, %v1018_v16, %v1009_v43  ;;  %v986_v54 = vadd.f32 %v2019_v13, %v1683_v44 }
 0x563   :  { %v1061_v19 = vmax.f32 %v1059_v52, %v1060_v63  ;;  %v1069_v5 = vrot.slane %v1068_v49, 2  ;;  %v1162_v6 = vsel %vm437_vm3, %v1027_v23, %v1161_v0  ;;  %v987_v21 = vadd.f32 %v2021_v32, %v1695_v51 }
 0x564   :  { %v1054_v9 = vmax.f32 %v1052_v11, %v1053_v27  ;;  %v1163_v31 = vsel %vm439_vm4, %v1036_v22, %v1162_v6  ;;  %v988_v45 = vadd.f32 %v2019_v13, %v1693_v50  ;;  %v989_v38 = vadd.f32 %v2021_v32, %v1711_v2 }
 0x565   :  { %v1062_v62 = vrot.slane %v1061_v19, 1  ;;  %v1070_v14 = vmax.f32 %v1068_v49, %v1069_v5  ;;  %v1164_v44 = vsel %vm441_vm5, %v1045_v28, %v1163_v31  ;;  %v990_v48 = vadd.f32 %v2019_v13, %v1709_v1 }
 0x566   :  { %v1165_v18 = vsel %vm443_vm6, %v1054_v9, %v1164_v44  ;;  %v991_v51 = vadd.f32 %v2021_v32, %v1739_v25  ;;  %v992_v33 = vadd.f32 %v2019_v13, %v1737_v24  ;;  %v993_v50 = vadd.f32 %v2021_v32, %v2204_v57 }
 0x567   :  { %v1063_v55 = vmax.f32 %v1061_v19, %v1062_v62  ;;  %v1071_v2 = vrot.slane %v1070_v14, 1  ;;  %v994_v53 = vadd.f32 %v2019_v13, %v2205_v4  ;;  %v995_v8 = vadd.f32 %v2021_v32, %v2206_v56 }
 0x568   :  { %v996_v1 = vadd.f32 %v2019_v13, %v2207_v47  ;;  %v997_v25 = vadd.f32 %v2021_v32, %v2208_v20  ;;  %v998_v24 = vadd.f32 %v2019_v13, %v2209_v42  ;;  %v999_v57 = vadd.f32 %v2021_v32, %v2212_v26 }
 0x569   :  { %v1072_v60 = vmax.f32 %v1070_v14, %v1071_v2  ;;  %v1166_v17 = vsel %vm445_vm7, %v1063_v55, %v1165_v18  ;;  %v1000_v4 = vadd.f32 %v2019_v13, %v2213_v3  ;;  %v1073_v56 = vsel %vm553_vm9, %v985_v61, -inf }
 0x56a   :  { %v1074_v41 = vsel %vm553_vm9, %v986_v54, -inf  ;;  %v1082_v47 = vsel %vm553_vm9, %v987_v21, -inf  ;;  %v1083_v20 = vsel %vm553_vm9, %v988_v45, -inf  ;;  %v1091_v37 = vsel %vm553_vm9, %v989_v38, -inf }
 0x56b   :  { %v1167_v42 = vsel %vm447_vm8, %v1072_v60, %v1166_v17  ;;  %v1075_v36 = vmax.f32 %v1073_v56, %v1074_v41  ;;  %v1084_v39 = vmax.f32 %v1082_v47, %v1083_v20  ;;  %v1092_v35 = vsel %vm553_vm9, %v990_v48, -inf }
 0x56c   :  { %v1177_v34 = vadd.f32 %v1167_v42, %v2021_v32  ;;  %v1093_v40 = vmax.f32 %v1091_v37, %v1092_v35  ;;  %v1100_v10 = vsel %vm553_vm9, %v991_v51, -inf  ;;  %v1101_v7 = vsel %vm553_vm9, %v992_v33, -inf }
 0x56d   :  { %v1076_v59 = vrot.slane %v1075_v36, 4  ;;  %v1085_v46 = vrot.slane %v1084_v39, 4  ;;  %v1102_v58 = vmax.f32 %v1100_v10, %v1101_v7  ;;  %v1109_v12 = vsel %vm553_vm9, %v993_v50, -inf }
 0x56e   :  { %1406 = vmatprep.mubr.msk.f32.mxu0 %vm553_vm9, %v1177_v34  ;;  %v1094_v43 = vrot.slane %v1093_v40, 4  ;;  %v1110_v30 = vsel %vm553_vm9, %v994_v53, -inf  ;;  %v1118_v52 = vsel %vm553_vm9, %v995_v8, -inf  ;;  %v1119_v29 = vsel %vm553_vm9, %v996_v1, -inf }
 0x56f   :  { %v1077_v32 = vmax.f32 %v1075_v36, %v1076_v59  ;;  %v1086_v16 = vmax.f32 %v1084_v39, %v1085_v46  ;;  %v1103_v23 = vrot.slane %v1102_v58, 4  ;;  %v1111_v15 = vmax.f32 %v1109_v12, %v1110_v30 }
 0x570   :  { %v1095_v11 = vmax.f32 %v1093_v40, %v1094_v43  ;;  %v1120_v22 = vmax.f32 %v1118_v52, %v1119_v29  ;;  %v1127_v63 = vsel %vm553_vm9, %v997_v25, -inf  ;;  %v1128_v49 = vsel %vm553_vm9, %v998_v24, -inf  ;;  %v1360_v52 = vld [vmem:[%s2175_s11] ss:$0 sm:$0xff] }
 0x571   :  { %v1078_v61 = vrot.slane %v1077_v32, 2  ;;  %v1087_v28 = vrot.slane %v1086_v16, 2  ;;  %v1104_v27 = vmax.f32 %v1102_v58, %v1103_v23  ;;  %v1112_v0 = vrot.slane %v1111_v15, 4 }
 0x572   :  { %v1096_v54 = vrot.slane %v1095_v11, 2  ;;  %v1121_v19 = vrot.slane %v1120_v22, 4  ;;  %v1129_v5 = vmax.f32 %v1127_v63, %v1128_v49  ;;  %v1136_v6 = vsel %vm553_vm9, %v999_v57, -inf }
 0x573   :  { %v1079_v21 = vmax.f32 %v1077_v32, %v1078_v61  ;;  %v1088_v9 = vmax.f32 %v1086_v16, %v1087_v28  ;;  %v1105_v31 = vrot.slane %v1104_v27, 2  ;;  %v1113_v45 = vmax.f32 %v1111_v15, %v1112_v0 }
 0x574   :  { %v1097_v38 = vmax.f32 %v1095_v11, %v1096_v54  ;;  %v1122_v62 = vmax.f32 %v1120_v22, %v1121_v19  ;;  %v1130_v14 = vrot.slane %v1129_v5, 4  ;;  %v1137_v44 = vsel %vm553_vm9, %v1000_v4, -inf }
 0x575   :  { %v1080_v48 = vrot.slane %v1079_v21, 1  ;;  %v1089_v18 = vrot.slane %v1088_v9, 1  ;;  %v1106_v51 = vmax.f32 %v1104_v27, %v1105_v31  ;;  %v1114_v33 = vrot.slane %v1113_v45, 2 }
 0x576   :  { %v1098_v50 = vrot.slane %v1097_v38, 1  ;;  %v1123_v55 = vrot.slane %v1122_v62, 2  ;;  %v1131_v2 = vmax.f32 %v1129_v5, %v1130_v14  ;;  %v1138_v53 = vmax.f32 %v1136_v6, %v1137_v44 }
 0x577   :  { %v1081_v8 = vmax.f32 %v1079_v21, %v1080_v48  ;;  %v1090_v1 = vmax.f32 %v1088_v9, %v1089_v18  ;;  %v1107_v25 = vrot.slane %v1106_v51, 1  ;;  %v1115_v24 = vmax.f32 %v1113_v45, %v1114_v33  ;;  %v1364_v18 = vld [vmem:[%s2177_s13] ss:$0 sm:$0xff] }
 0x578   :  { %v1099_v26 = vmax.f32 %v1097_v38, %v1098_v50  ;;  %v1124_v57 = vmax.f32 %v1122_v62, %v1123_v55  ;;  %v1132_v60 = vrot.slane %v1131_v2, 2  ;;  %v1139_v17 = vrot.slane %v1138_v53, 4  ;;  %v1363_v62 = vld [vmem:[%s2176_s12] ss:$0 sm:$0xff]  ;;  %s1334_s12 = sshll.u32 %s1480_s21, 4  ;;  %s1335_s12 = int_to_ptr.vmem [resolvable:$true] %s1334_s12 }
 0x579   :  { %v1108_v3 = vmax.f32 %v1106_v51, %v1107_v25  ;;  %v1116_v56 = vrot.slane %v1115_v24, 1  ;;  %v1168_v4 = vsel %vm435_vm2, %v1090_v1, %v1081_v8  ;;  %s1455_s13 = scalar_lea.vmem %s1335_s12, 256  ;;  %p1460_p1 = scmp.lt.s32.totalorder %s1335_s12, %s1335_s12 }
 0x57a   :  { %v1125_v41 = vrot.slane %v1124_v57, 1  ;;  %v1133_v47 = vmax.f32 %v1131_v2, %v1132_v60  ;;  %v1140_v20 = vmax.f32 %v1138_v53, %v1139_v17  ;;  %v1169_v37 = vsel %vm437_vm3, %v1099_v26, %v1168_v4  ;;  %p1456_p0 = scmp.ne.s32.totalorder %s1335_s12, %s1455_s13  ;;  %p1461_p2 = scmp.lt.s32.totalorder %s1455_s13, %s1455_s13 }
 0x57b   :  { %v1117_v42 = vmax.f32 %v1115_v24, %v1116_v56  ;;  %v1170_v36 = vsel %vm439_vm4, %v1108_v3, %v1169_v37 }
 0x57c   :  { %v1126_v39 = vmax.f32 %v1124_v57, %v1125_v41  ;;  %v1134_v35 = vrot.slane %v1133_v47, 1  ;;  %v1141_v34 = vrot.slane %v1140_v20, 2  ;;  %p1462_p3 = por %p1461_p2, %p1460_p1 }
 0x57d   :  { %v1171_v40 = vsel %vm441_vm5, %v1117_v42, %v1170_v36 }
 0x57e   :  { %v1142_v10 = vmax.f32 %v1140_v20, %v1141_v34  ;;  %v1172_v7 = vsel %vm443_vm6, %v1126_v39, %v1171_v40  ;;  %v1135_v59 = vmax.f32 %v1133_v47, %v1134_v35  ;;  %p1463_p4 = pnand %p1462_p3, %p1456_p0 }
 0x580   :  { %v1143_v46 = vrot.slane %v1142_v10, 1  ;;  %v1173_v58 = vsel %vm445_vm7, %v1135_v59, %v1172_v7 }
 0x582   :  { %v1144_v12 = vmax.f32 %v1142_v10, %v1143_v46 }
 0x584   :  { %v1174_v43 = vsel %vm447_vm8, %v1144_v12, %v1173_v58 }
 0x585   :  { %v1178_v30 = vadd.f32 %v1174_v43, %v2019_v13 }
 0x587   :  { %1407 = vmatmul.mubr.msk.f32.vlgmr.msra.gmra.mrb[2].mxu0 %vm553_vm9, %v1178_v30 }
 0x65a   :  { %v1408_v29 = vpop.f32.mrb[2].mxu0 }
 0x65b   :  { %v1268_v32 = vadd.f32 %v1408_v29, %v1360_v52  ;;  %v1262_v16 = vpop.f32.mrb[3].mxu0 }
 0x65c   :  { %v1263_v23 = vadd.f32 %v1360_v52, %v1262_v16 }
 0x65d   :  { %v1274_v15 = vsel %vm553_vm9, %v1268_v32, 0.0 }
 0x65e   :  { %1275 = vadd.xlane.f32.xlu0 %v1274_v15  ;;  %v1271_v11 = vsel %vm553_vm9, %v1263_v23, 0.0 }
 0x65f   :  { %1272 = vadd.xlane.f32.xlu1 %v1271_v11 }
 0x6eb   :  { %v1276_v22 = vpop.xlane.xlu0 %1275 }
 0x6ec   :  { %v1278_v63 = vmul.f32 0.03125, %v1276_v22  ;;  %v1273_v49 = vpop.xlane.xlu1 %1272 }
 0x6ed   :  { %v1277_v13 = vmul.f32 0.03125, %v1273_v49 }
 0x6ee   :  { %v1280_v61 = vsub.f32 %v1268_v32, %v1278_v63 }
 0x6ef   :  { %v1279_v28 = vsub.f32 %v1263_v23, %v1277_v13 }
 0x6f0   :  { %v1282_v27 = vmul.f32 %v1280_v61, %v1280_v61 }
 0x6f1   :  { %v1281_v0 = vmul.f32 %v1279_v28, %v1279_v28 }
 0x6f2   :  { %v1286_v54 = vsel %vm553_vm9, %v1282_v27, 0.0 }
 0x6f3   :  { %1287 = vadd.xlane.f32.xlu0 %v1286_v54  ;;  %v1283_v19 = vsel %vm553_vm9, %v1281_v0, 0.0 }
 0x6f4   :  { %1284 = vadd.xlane.f32.xlu1 %v1283_v19 }
 0x780   :  { %v1288_v5 = vpop.xlane.xlu0 %1287 }
 0x781   :  { %v1290_v6 = vmul.f32 0.03125, %v1288_v5  ;;  %v1285_v21 = vpop.xlane.xlu1 %1284 }
 0x782   :  { %v1289_v9 = vmul.f32 0.03125, %v1285_v21 }
 0x783   :  { %v1292_v31 = vadd.f32 1e-05, %v1290_v6 }
 0x784   :  { %v1291_v45 = vadd.f32 1e-05, %v1289_v9 }
 0x785   :  { %1447 = vrsqrt.f32 %v1292_v31 }
 0x786   :  { %1449 = vrsqrt.f32 %v1291_v45 }
 0x78f   :  { %v1448_v38 = vpop.eup %1447 }
 0x790   :  { %v1450_v14 = vpop.eup %1449  ;;  %v1296_v44 = vmul.f32 %v1448_v38, %v1280_v61 }
 0x791   :  { %v1295_v48 = vmul.f32 %v1450_v14, %v1279_v28 }
 0x792   :  { %v1305_v51 = vmul.f32 %v1363_v62, %v1296_v44 }
 0x793   :  { %v1304_v33 = vmul.f32 %v1363_v62, %v1295_v48 }
 0x794   :  { %v1314_v50 = vadd.f32 %v1364_v18, %v1305_v51 }
 0x795   :  { %v1313_v55 = vadd.f32 %v1364_v18, %v1304_v33 }
 0x796   :  { %v1318_v2 = vmin.f32 %v1314_v50, 0.0  ;;  %vm1316_vm14 = vcmp.gt.f32.partialorder %v1314_v50, 0.0 }
 0x797   :  { %v1317_v53 = vmin.f32 %v1313_v55, 0.0  ;;  %vm1315_vm15 = vcmp.gt.f32.partialorder %v1313_v55, 0.0 }
 0x798   :  { %v1321_v8 = vmul.f32 1.442695, %v1318_v2 }
 0x799   :  { %v1319_v1 = vmul.f32 1.442695, %v1317_v53 }
 0x79a   :  { %1451 = vpow2.f32 %v1321_v8 }
 0x79b   :  { %1453 = vpow2.f32 %v1319_v1 }
 0x7a4   :  { %v1452_v25 = vpop.eup %1451 }
 0x7a5   :  { %v1454_v24 = vpop.eup %1453  ;;  %v1366_v26 = vadd.f32 -1.0, %v1452_v25 }
 0x7a6   :  { %v1365_v57 = vadd.f32 -1.0, %v1454_v24 }
 0x7a7   :  { %v1326_v60 = vsel %vm1316_vm14, %v1314_v50, %v1366_v26 }
 0x7a8   :  { %v1325_v17 = vsel %vm1315_vm15, %v1313_v55, %v1365_v57  ;;  %1328 = vst.msk [vmem:[#allocation2 + $0x8] sm:$0xff] %vm553_vm9, %v1326_v60 }
 0x7a9   :  { %1327 = vst.msk [vmem:[#allocation2] sm:$0xff] %vm553_vm9, %v1325_v17 }
 0x7aa   :  { %1466 = shalt.err (!%p1463_p4)
}
 0x7ab   :  { %s1467_s24 = scalar_lea.hbm %s2178_s14, 256 }
 0x7ac   :  { %p1468_p5 = scmp.ne.s32.totalorder %s2178_s14, %s1467_s24  ;;  %p1471_p6 = scmp.lt.u32.totalorder %s1467_s24, %s2178_s14 }
 0x7ae   :  { %p1473_p7 = pnand %p1471_p6, %p1468_p5 }
 0x7b0   :  { %1476 = shalt.err (!%p1473_p7)
}
 0x7b1   :  { %s1481_s4 = smov 128   ;;  %s1482_s5 = smov 8  }
 0x7b2   :  { %1340 = dma.vmem_to_hbm [thread:$0]  %s1335_s12, 256, %s2178_s14, [#allocation3], %s1481_s4, %s1481_s4, %s1482_s5  }
 0x7b3   :  { %1477 = dma.done.wait [#allocation3], 256  }
 0x7b4   :  { %1478 = vsyncadd [#allocation3], 4294967040 }
 0x7b5   :  { %1344 = vsyncpa [#allocation3], 1 }

</bundles_post_ra>
